<compile_context>
chip_gen: v7x
topology: tpu7x:2x2x1
jax: 0.10.0
libtpu: 0.0.40
codegen_flags: <defaults>
</compile_context>

<pallas_src>
import jax
import jax.numpy as jnp
from jax.experimental import pallas as pl
from jax.experimental.pallas import tpu as pltpu


_VMEM = pl.BlockSpec(memory_space=pltpu.MemorySpace.VMEM)


# ------------------------------ fused kernel --------------------------------

def _make_cnn_kernel(B, OH1, OW1, OH2, OW2, C1, C2, K):
    """Fused SimpleCNN body: conv1+ReLU -> conv2+ReLU -> mean-pool -> FC."""

    def kernel(xph_ref, w1_ref, b1_ref, w2_ref, b2_ref, wfc_ref, bfc_ref,
               o_ref, h1_ref):
        # ---- conv1 (1 -> C1, 3x3, stride 2) + ReLU: VPU tap-accumulate ------
        # xph_ref[b, p, u, v, q] == img[b, 2u+p, 2v+q], so the stride-2 window
        # for tap (i, j) is the unit-stride slice below (p=i%2, di=i//2, ...).
        acc1 = None
        for i in range(K):
            for j in range(K):
                p, di = i % 2, i // 2
                q, dj = j % 2, j // 2
                xs = xph_ref[:, p, di:di + OH1, dj:dj + OW1, q:q + 1]  # (B,OH1,OW1,1)
                t = i * K + j
                term = xs * w1_ref[t:t + 1, :]                         # -> (B,OH1,OW1,C1)
                acc1 = term if acc1 is None else acc1 + term
        h1_ref[...] = jnp.maximum(acc1 + b1_ref[...], 0.0)             # VMEM scratch only

        # ---- conv2 (C1 -> C2, 3x3, stride 2) + ReLU + AdaptiveAvgPool2d(1) --
        # One im2col row per output position, gathered from VMEM scratch with
        # static slices; ReLU'd conv2 outputs are mean-pooled on the fly, so h2
        # is never materialized (and never stored to HBM).
        w2 = w2_ref[...]
        b2 = b2_ref[...]
        pool_acc = jnp.zeros((B, C2), dtype=jnp.float32)
        for m in range(OH2):
            for n in range(OW2):
                row = jnp.concatenate(
                    [h1_ref[:, 2 * m + i, 2 * n + j, :]
                     for i in range(K) for j in range(K)],
                    axis=-1)                                           # (B, K*K*C1)
                h2 = jnp.dot(row, w2, preferred_element_type=jnp.float32) + b2
                pool_acc = pool_acc + jnp.maximum(h2, 0.0)
        pooled = pool_acc * (1.0 / float(OH2 * OW2))                   # (B, C2)

        # ---- fc: Linear(C2, out_feats); only store that leaves the kernel ---
        o_ref[...] = (jnp.dot(pooled, wfc_ref[...],
                              preferred_element_type=jnp.float32) + bfc_ref[...])

    return kernel


# ------------------------------ host wrappers --------------------------------

def prepare_params(torch_params):
    """One-time layout prep (hoisted out of the forward path):
    conv OIHW -> (kh*kw*cin, cout) GEMM layout, biases -> (1, N) rows."""
    w1, b1, w2, b2, wfc, bfc = torch_params
    w1m = jnp.transpose(w1, (2, 3, 1, 0)).reshape(
        w1.shape[2] * w1.shape[3] * w1.shape[1], w1.shape[0])
    w2m = jnp.transpose(w2, (2, 3, 1, 0)).reshape(
        w2.shape[2] * w2.shape[3] * w2.shape[1], w2.shape[0])
    return (w1m, b1.reshape(1, -1), w2m, b2.reshape(1, -1), wfc, bfc.reshape(1, -1))


def simple_cnn_forward(img, prepared_params):
    """img: (B, H, W) float32 (torch forward does the unsqueeze(1) itself)."""
    w1m, b1, w2m, b2, wfc, bfc = prepared_params
    B, H, W = img.shape
    assert H % 2 == 0 and W % 2 == 0, "even spatial dims expected"
    K = 3
    C1, C2, F = w1m.shape[1], w2m.shape[1], wfc.shape[1]
    OH1, OW1 = (H - K) // 2 + 1, (W - K) // 2 + 1
    OH2, OW2 = (OH1 - K) // 2 + 1, (OW1 - K) // 2 + 1

    # 2 KiB layout-only transform of the raw input (no k*k patch expansion):
    # xph[b, p, u, v, q] = img[b, 2u + p, 2v + q]
    xph = jnp.transpose(img.reshape(B, H // 2, 2, W // 2, 2), (0, 2, 1, 3, 4))

    kernel = _make_cnn_kernel(B, OH1, OW1, OH2, OW2, C1, C2, K)
    out = pl.pallas_call(
        kernel,
        out_shape=jax.ShapeDtypeStruct((B, F), jnp.float32),
        in_specs=[_VMEM] * 7,
        out_specs=_VMEM,
        scratch_shapes=[pltpu.VMEM((B, OH1, OW1, C1), jnp.float32)],   # h1 stays in VMEM
    )(xph, w1m, b1, w2m, b2, wfc, bfc)

    # torch .squeeze(0): only drops the batch dim when B == 1
    return out[0] if out.shape[0] == 1 else out


# ------------------------- pure-JAX reference check --------------------------

def reference_forward(img, torch_params):
    w1, b1, w2, b2, wfc, bfc = torch_params
    dn = ("NCHW", "OIHW", "NCHW")
    x = img[:, None, :, :]
    y = jax.lax.conv_general_dilated(x, w1, (2, 2), "VALID", dimension_numbers=dn)
    y = jax.nn.relu(y + b1[None, :, None, None])
    y = jax.lax.conv_general_dilated(y, w2, (2, 2), "VALID", dimension_numbers=dn)
    y = jax.nn.relu(y + b2[None, :, None, None])
    pooled = jnp.mean(y, axis=(2, 3))                 # (B, 16)
    out = pooled @ wfc + bfc
    return out[0] if out.shape[0] == 1 else out


# ---------------------------------- main -------------------------------------

if __name__ == "__main__":
    out_feats = 32                    # PCBPolicy builds SimpleCNN(32)
    B, H, W = 2, 16, 16

    key = jax.random.PRNGKey(0)
    k_img, k1, k2, k3, k4, k5, k6 = jax.random.split(key, 7)

    img = jax.random.normal(k_img, (B, H, W), dtype=jnp.float32)

    # Deterministic synthetic parameters (torch shapes: conv OIHW, fc stored
    # pre-transposed as (in, out)).
    w1 = jax.random.normal(k1, (8, 1, 3, 3), dtype=jnp.float32) * 0.2
    b1 = jax.random.normal(k2, (8,), dtype=jnp.float32) * 0.1
    w2 = jax.random.normal(k3, (16, 8, 3, 3), dtype=jnp.float32) * 0.1
    b2 = jax.random.normal(k4, (16,), dtype=jnp.float32) * 0.1
    wfc = jax.random.normal(k5, (16, out_feats), dtype=jnp.float32) * 0.2
    bfc = jax.random.normal(k6, (out_feats,), dtype=jnp.float32) * 0.1
    torch_params = (w1, b1, w2, b2, wfc, bfc)

    prepared = prepare_params(torch_params)       # hoisted: done once, not per forward

    fwd = jax.jit(simple_cnn_forward)
    out = jax.block_until_ready(fwd(img, prepared))

    ref = jax.block_until_ready(reference_forward(img, torch_params))
    assert out.shape == ref.shape == (B, out_feats), (out.shape, ref.shape)
    assert jnp.allclose(out, ref, atol=1e-4, rtol=1e-4), (out, ref)

    print("KERNEL_OK")
</pallas_src>

<mosaic_0001>
module attributes {stable_mosaic.version = 11 : i64} {
  func.func @kernel(%arg0: memref<2x2x8x8x2xf32, #tpu.memory_space<vmem>>, %arg1: memref<9x8xf32, #tpu.memory_space<vmem>>, %arg2: memref<1x8xf32, #tpu.memory_space<vmem>>, %arg3: memref<72x16xf32, #tpu.memory_space<vmem>>, %arg4: memref<1x16xf32, #tpu.memory_space<vmem>>, %arg5: memref<16x32xf32, #tpu.memory_space<vmem>>, %arg6: memref<1x32xf32, #tpu.memory_space<vmem>>, %arg7: memref<2x32xf32, #tpu.memory_space<vmem>>, %arg8: memref<2x7x7x8xf32, #tpu.memory_space<vmem>>) attributes {dimension_semantics = [], scalar_prefetch = 0 : i64, scratch_operands = 1 : i64, tpu.core_type = #tpu.core_type<tc>} {
    %c0 = arith.constant 0 : index
    %c0_0 = arith.constant 0 : index
    %c0_1 = arith.constant 0 : index
    %c0_2 = arith.constant 0 : index
    %c0_3 = arith.constant 0 : index
    %0 = vector.load %arg0[%c0, %c0_0, %c0_1, %c0_2, %c0_3] : memref<2x2x8x8x2xf32, #tpu.memory_space<vmem>>, vector<2x1x7x7x1xf32>
    %1 = vector.shape_cast %0 : vector<2x1x7x7x1xf32> to vector<2x7x7x1xf32>
    %c0_4 = arith.constant 0 : index
    %c0_5 = arith.constant 0 : index
    %2 = vector.load %arg1[%c0_4, %c0_5] : memref<9x8xf32, #tpu.memory_space<vmem>>, vector<1x8xf32>
    %3 = vector.shape_cast %2 : vector<1x8xf32> to vector<1x1x1x8xf32>
    %4 = vector.broadcast %1 : vector<2x7x7x1xf32> to vector<2x7x7x8xf32>
    %5 = vector.broadcast %3 : vector<1x1x1x8xf32> to vector<2x7x7x8xf32>
    %6 = arith.mulf %4, %5 : vector<2x7x7x8xf32>
    %c0_6 = arith.constant 0 : index
    %c0_7 = arith.constant 0 : index
    %c0_8 = arith.constant 0 : index
    %c0_9 = arith.constant 0 : index
    %c1 = arith.constant 1 : index
    %7 = vector.load %arg0[%c0_6, %c0_7, %c0_8, %c0_9, %c1] : memref<2x2x8x8x2xf32, #tpu.memory_space<vmem>>, vector<2x1x7x7x1xf32>
    %8 = vector.shape_cast %7 : vector<2x1x7x7x1xf32> to vector<2x7x7x1xf32>
    %c1_10 = arith.constant 1 : index
    %c0_11 = arith.constant 0 : index
    %9 = vector.load %arg1[%c1_10, %c0_11] : memref<9x8xf32, #tpu.memory_space<vmem>>, vector<1x8xf32>
    %10 = vector.shape_cast %9 : vector<1x8xf32> to vector<1x1x1x8xf32>
    %11 = vector.broadcast %8 : vector<2x7x7x1xf32> to vector<2x7x7x8xf32>
    %12 = vector.broadcast %10 : vector<1x1x1x8xf32> to vector<2x7x7x8xf32>
    %13 = arith.mulf %11, %12 : vector<2x7x7x8xf32>
    %14 = arith.addf %6, %13 : vector<2x7x7x8xf32>
    %c0_12 = arith.constant 0 : index
    %c0_13 = arith.constant 0 : index
    %c0_14 = arith.constant 0 : index
    %c1_15 = arith.constant 1 : index
    %c0_16 = arith.constant 0 : index
    %15 = vector.load %arg0[%c0_12, %c0_13, %c0_14, %c1_15, %c0_16] : memref<2x2x8x8x2xf32, #tpu.memory_space<vmem>>, vector<2x1x7x7x1xf32>
    %16 = vector.shape_cast %15 : vector<2x1x7x7x1xf32> to vector<2x7x7x1xf32>
    %c2 = arith.constant 2 : index
    %c0_17 = arith.constant 0 : index
    %17 = vector.load %arg1[%c2, %c0_17] : memref<9x8xf32, #tpu.memory_space<vmem>>, vector<1x8xf32>
    %18 = vector.shape_cast %17 : vector<1x8xf32> to vector<1x1x1x8xf32>
    %19 = vector.broadcast %16 : vector<2x7x7x1xf32> to vector<2x7x7x8xf32>
    %20 = vector.broadcast %18 : vector<1x1x1x8xf32> to vector<2x7x7x8xf32>
    %21 = arith.mulf %19, %20 : vector<2x7x7x8xf32>
    %22 = arith.addf %14, %21 : vector<2x7x7x8xf32>
    %c0_18 = arith.constant 0 : index
    %c1_19 = arith.constant 1 : index
    %c0_20 = arith.constant 0 : index
    %c0_21 = arith.constant 0 : index
    %c0_22 = arith.constant 0 : index
    %23 = vector.load %arg0[%c0_18, %c1_19, %c0_20, %c0_21, %c0_22] : memref<2x2x8x8x2xf32, #tpu.memory_space<vmem>>, vector<2x1x7x7x1xf32>
    %24 = vector.shape_cast %23 : vector<2x1x7x7x1xf32> to vector<2x7x7x1xf32>
    %c3 = arith.constant 3 : index
    %c0_23 = arith.constant 0 : index
    %25 = vector.load %arg1[%c3, %c0_23] : memref<9x8xf32, #tpu.memory_space<vmem>>, vector<1x8xf32>
    %26 = vector.shape_cast %25 : vector<1x8xf32> to vector<1x1x1x8xf32>
    %27 = vector.broadcast %24 : vector<2x7x7x1xf32> to vector<2x7x7x8xf32>
    %28 = vector.broadcast %26 : vector<1x1x1x8xf32> to vector<2x7x7x8xf32>
    %29 = arith.mulf %27, %28 : vector<2x7x7x8xf32>
    %30 = arith.addf %22, %29 : vector<2x7x7x8xf32>
    %c0_24 = arith.constant 0 : index
    %c1_25 = arith.constant 1 : index
    %c0_26 = arith.constant 0 : index
    %c0_27 = arith.constant 0 : index
    %c1_28 = arith.constant 1 : index
    %31 = vector.load %arg0[%c0_24, %c1_25, %c0_26, %c0_27, %c1_28] : memref<2x2x8x8x2xf32, #tpu.memory_space<vmem>>, vector<2x1x7x7x1xf32>
    %32 = vector.shape_cast %31 : vector<2x1x7x7x1xf32> to vector<2x7x7x1xf32>
    %c4 = arith.constant 4 : index
    %c0_29 = arith.constant 0 : index
    %33 = vector.load %arg1[%c4, %c0_29] : memref<9x8xf32, #tpu.memory_space<vmem>>, vector<1x8xf32>
    %34 = vector.shape_cast %33 : vector<1x8xf32> to vector<1x1x1x8xf32>
    %35 = vector.broadcast %32 : vector<2x7x7x1xf32> to vector<2x7x7x8xf32>
    %36 = vector.broadcast %34 : vector<1x1x1x8xf32> to vector<2x7x7x8xf32>
    %37 = arith.mulf %35, %36 : vector<2x7x7x8xf32>
    %38 = arith.addf %30, %37 : vector<2x7x7x8xf32>
    %c0_30 = arith.constant 0 : index
    %c1_31 = arith.constant 1 : index
    %c0_32 = arith.constant 0 : index
    %c1_33 = arith.constant 1 : index
    %c0_34 = arith.constant 0 : index
    %39 = vector.load %arg0[%c0_30, %c1_31, %c0_32, %c1_33, %c0_34] : memref<2x2x8x8x2xf32, #tpu.memory_space<vmem>>, vector<2x1x7x7x1xf32>
    %40 = vector.shape_cast %39 : vector<2x1x7x7x1xf32> to vector<2x7x7x1xf32>
    %c5 = arith.constant 5 : index
    %c0_35 = arith.constant 0 : index
    %41 = vector.load %arg1[%c5, %c0_35] : memref<9x8xf32, #tpu.memory_space<vmem>>, vector<1x8xf32>
    %42 = vector.shape_cast %41 : vector<1x8xf32> to vector<1x1x1x8xf32>
    %43 = vector.broadcast %40 : vector<2x7x7x1xf32> to vector<2x7x7x8xf32>
    %44 = vector.broadcast %42 : vector<1x1x1x8xf32> to vector<2x7x7x8xf32>
    %45 = arith.mulf %43, %44 : vector<2x7x7x8xf32>
    %46 = arith.addf %38, %45 : vector<2x7x7x8xf32>
    %c0_36 = arith.constant 0 : index
    %c0_37 = arith.constant 0 : index
    %c1_38 = arith.constant 1 : index
    %c0_39 = arith.constant 0 : index
    %c0_40 = arith.constant 0 : index
    %47 = vector.load %arg0[%c0_36, %c0_37, %c1_38, %c0_39, %c0_40] : memref<2x2x8x8x2xf32, #tpu.memory_space<vmem>>, vector<2x1x7x7x1xf32>
    %48 = vector.shape_cast %47 : vector<2x1x7x7x1xf32> to vector<2x7x7x1xf32>
    %c6 = arith.constant 6 : index
    %c0_41 = arith.constant 0 : index
    %49 = vector.load %arg1[%c6, %c0_41] : memref<9x8xf32, #tpu.memory_space<vmem>>, vector<1x8xf32>
    %50 = vector.shape_cast %49 : vector<1x8xf32> to vector<1x1x1x8xf32>
    %51 = vector.broadcast %48 : vector<2x7x7x1xf32> to vector<2x7x7x8xf32>
    %52 = vector.broadcast %50 : vector<1x1x1x8xf32> to vector<2x7x7x8xf32>
    %53 = arith.mulf %51, %52 : vector<2x7x7x8xf32>
    %54 = arith.addf %46, %53 : vector<2x7x7x8xf32>
    %c0_42 = arith.constant 0 : index
    %c0_43 = arith.constant 0 : index
    %c1_44 = arith.constant 1 : index
    %c0_45 = arith.constant 0 : index
    %c1_46 = arith.constant 1 : index
    %55 = vector.load %arg0[%c0_42, %c0_43, %c1_44, %c0_45, %c1_46] : memref<2x2x8x8x2xf32, #tpu.memory_space<vmem>>, vector<2x1x7x7x1xf32>
    %56 = vector.shape_cast %55 : vector<2x1x7x7x1xf32> to vector<2x7x7x1xf32>
    %c7 = arith.constant 7 : index
    %c0_47 = arith.constant 0 : index
    %57 = vector.load %arg1[%c7, %c0_47] : memref<9x8xf32, #tpu.memory_space<vmem>>, vector<1x8xf32>
    %58 = vector.shape_cast %57 : vector<1x8xf32> to vector<1x1x1x8xf32>
    %59 = vector.broadcast %56 : vector<2x7x7x1xf32> to vector<2x7x7x8xf32>
    %60 = vector.broadcast %58 : vector<1x1x1x8xf32> to vector<2x7x7x8xf32>
    %61 = arith.mulf %59, %60 : vector<2x7x7x8xf32>
    %62 = arith.addf %54, %61 : vector<2x7x7x8xf32>
    %c0_48 = arith.constant 0 : index
    %c0_49 = arith.constant 0 : index
    %c1_50 = arith.constant 1 : index
    %c1_51 = arith.constant 1 : index
    %c0_52 = arith.constant 0 : index
    %63 = vector.load %arg0[%c0_48, %c0_49, %c1_50, %c1_51, %c0_52] : memref<2x2x8x8x2xf32, #tpu.memory_space<vmem>>, vector<2x1x7x7x1xf32>
    %64 = vector.shape_cast %63 : vector<2x1x7x7x1xf32> to vector<2x7x7x1xf32>
    %c8 = arith.constant 8 : index
    %c0_53 = arith.constant 0 : index
    %65 = vector.load %arg1[%c8, %c0_53] : memref<9x8xf32, #tpu.memory_space<vmem>>, vector<1x8xf32>
    %66 = vector.shape_cast %65 : vector<1x8xf32> to vector<1x1x1x8xf32>
    %67 = vector.broadcast %64 : vector<2x7x7x1xf32> to vector<2x7x7x8xf32>
    %68 = vector.broadcast %66 : vector<1x1x1x8xf32> to vector<2x7x7x8xf32>
    %69 = arith.mulf %67, %68 : vector<2x7x7x8xf32>
    %70 = arith.addf %62, %69 : vector<2x7x7x8xf32>
    %c0_54 = arith.constant 0 : index
    %c0_55 = arith.constant 0 : index
    %71 = vector.load %arg2[%c0_54, %c0_55] : memref<1x8xf32, #tpu.memory_space<vmem>>, vector<1x8xf32>
    %72 = vector.shape_cast %71 : vector<1x8xf32> to vector<1x1x1x8xf32>
    %73 = vector.broadcast %72 : vector<1x1x1x8xf32> to vector<2x7x7x8xf32>
    %74 = arith.addf %70, %73 : vector<2x7x7x8xf32>
    %cst = arith.constant 0.000000e+00 : f32
    %75 = vector.broadcast %cst : f32 to vector<2x7x7x8xf32>
    %76 = arith.maximumf %74, %75 : vector<2x7x7x8xf32>
    %c0_56 = arith.constant 0 : index
    %c0_57 = arith.constant 0 : index
    %c0_58 = arith.constant 0 : index
    %c0_59 = arith.constant 0 : index
    %77 = vector.load %arg8[%c0_56, %c0_57, %c0_58, %c0_59] : memref<2x7x7x8xf32, #tpu.memory_space<vmem>>, vector<2x7x7x8xf32>
    tpu.vector_store %arg8[%c0_56, %c0_57, %c0_58, %c0_59], %76 {strides = array<i32>} : memref<2x7x7x8xf32, #tpu.memory_space<vmem>>, vector<2x7x7x8xf32>,
    %c0_60 = arith.constant 0 : index
    %c0_61 = arith.constant 0 : index
    %78 = vector.load %arg3[%c0_60, %c0_61] : memref<72x16xf32, #tpu.memory_space<vmem>>, vector<72x16xf32>
    %c0_62 = arith.constant 0 : index
    %c0_63 = arith.constant 0 : index
    %79 = vector.load %arg4[%c0_62, %c0_63] : memref<1x16xf32, #tpu.memory_space<vmem>>, vector<1x16xf32>
    %cst_64 = arith.constant 0.000000e+00 : f32
    %80 = vector.broadcast %cst_64 : f32 to vector<2x16xf32>
    %c0_65 = arith.constant 0 : index
    %c0_66 = arith.constant 0 : index
    %c0_67 = arith.constant 0 : index
    %c0_68 = arith.constant 0 : index
    %81 = vector.load %arg8[%c0_65, %c0_66, %c0_67, %c0_68] : memref<2x7x7x8xf32, #tpu.memory_space<vmem>>, vector<2x1x1x8xf32>
    %82 = vector.shape_cast %81 : vector<2x1x1x8xf32> to vector<2x8xf32>
    %c0_69 = arith.constant 0 : index
    %c0_70 = arith.constant 0 : index
    %c1_71 = arith.constant 1 : index
    %c0_72 = arith.constant 0 : index
    %83 = vector.load %arg8[%c0_69, %c0_70, %c1_71, %c0_72] : memref<2x7x7x8xf32, #tpu.memory_space<vmem>>, vector<2x1x1x8xf32>
    %84 = vector.shape_cast %83 : vector<2x1x1x8xf32> to vector<2x8xf32>
    %c0_73 = arith.constant 0 : index
    %c0_74 = arith.constant 0 : index
    %c2_75 = arith.constant 2 : index
    %c0_76 = arith.constant 0 : index
    %85 = vector.load %arg8[%c0_73, %c0_74, %c2_75, %c0_76] : memref<2x7x7x8xf32, #tpu.memory_space<vmem>>, vector<2x1x1x8xf32>
    %86 = vector.shape_cast %85 : vector<2x1x1x8xf32> to vector<2x8xf32>
    %c0_77 = arith.constant 0 : index
    %c1_78 = arith.constant 1 : index
    %c0_79 = arith.constant 0 : index
    %c0_80 = arith.constant 0 : index
    %87 = vector.load %arg8[%c0_77, %c1_78, %c0_79, %c0_80] : memref<2x7x7x8xf32, #tpu.memory_space<vmem>>, vector<2x1x1x8xf32>
    %88 = vector.shape_cast %87 : vector<2x1x1x8xf32> to vector<2x8xf32>
    %c0_81 = arith.constant 0 : index
    %c1_82 = arith.constant 1 : index
    %c1_83 = arith.constant 1 : index
    %c0_84 = arith.constant 0 : index
    %89 = vector.load %arg8[%c0_81, %c1_82, %c1_83, %c0_84] : memref<2x7x7x8xf32, #tpu.memory_space<vmem>>, vector<2x1x1x8xf32>
    %90 = vector.shape_cast %89 : vector<2x1x1x8xf32> to vector<2x8xf32>
    %c0_85 = arith.constant 0 : index
    %c1_86 = arith.constant 1 : index
    %c2_87 = arith.constant 2 : index
    %c0_88 = arith.constant 0 : index
    %91 = vector.load %arg8[%c0_85, %c1_86, %c2_87, %c0_88] : memref<2x7x7x8xf32, #tpu.memory_space<vmem>>, vector<2x1x1x8xf32>
    %92 = vector.shape_cast %91 : vector<2x1x1x8xf32> to vector<2x8xf32>
    %c0_89 = arith.constant 0 : index
    %c2_90 = arith.constant 2 : index
    %c0_91 = arith.constant 0 : index
    %c0_92 = arith.constant 0 : index
    %93 = vector.load %arg8[%c0_89, %c2_90, %c0_91, %c0_92] : memref<2x7x7x8xf32, #tpu.memory_space<vmem>>, vector<2x1x1x8xf32>
    %94 = vector.shape_cast %93 : vector<2x1x1x8xf32> to vector<2x8xf32>
    %c0_93 = arith.constant 0 : index
    %c2_94 = arith.constant 2 : index
    %c1_95 = arith.constant 1 : index
    %c0_96 = arith.constant 0 : index
    %95 = vector.load %arg8[%c0_93, %c2_94, %c1_95, %c0_96] : memref<2x7x7x8xf32, #tpu.memory_space<vmem>>, vector<2x1x1x8xf32>
    %96 = vector.shape_cast %95 : vector<2x1x1x8xf32> to vector<2x8xf32>
    %c0_97 = arith.constant 0 : index
    %c2_98 = arith.constant 2 : index
    %c2_99 = arith.constant 2 : index
    %c0_100 = arith.constant 0 : index
    %97 = vector.load %arg8[%c0_97, %c2_98, %c2_99, %c0_100] : memref<2x7x7x8xf32, #tpu.memory_space<vmem>>, vector<2x1x1x8xf32>
    %98 = vector.shape_cast %97 : vector<2x1x1x8xf32> to vector<2x8xf32>
    %99 = tpu.concatenate %82, %84, %86, %88, %90, %92, %94, %96, %98 in 1 : vector<2x8xf32>, vector<2x8xf32>, vector<2x8xf32>, vector<2x8xf32>, vector<2x8xf32>, vector<2x8xf32>, vector<2x8xf32>, vector<2x8xf32>, vector<2x8xf32> -> vector<2x72xf32>
    %cst_101 = arith.constant dense<0.000000e+00> : vector<2x16xf32>
    %100 = tpu.matmul %99, %78, %cst_101 {dimension_numbers = #tpu.dot_dimension_numbers<[1], [0], [0], [1], [0, 0, 1, 1], [], []>} : vector<2x72xf32>, vector<72x16xf32>, vector<2x16xf32> -> vector<2x16xf32>
    %101 = vector.broadcast %79 : vector<1x16xf32> to vector<2x16xf32>
    %102 = arith.addf %100, %101 : vector<2x16xf32>
    %cst_102 = arith.constant 0.000000e+00 : f32
    %103 = vector.broadcast %cst_102 : f32 to vector<2x16xf32>
    %104 = arith.maximumf %102, %103 : vector<2x16xf32>
    %105 = arith.addf %80, %104 : vector<2x16xf32>
    %c0_103 = arith.constant 0 : index
    %c0_104 = arith.constant 0 : index
    %c2_105 = arith.constant 2 : index
    %c0_106 = arith.constant 0 : index
    %106 = vector.load %arg8[%c0_103, %c0_104, %c2_105, %c0_106] : memref<2x7x7x8xf32, #tpu.memory_space<vmem>>, vector<2x1x1x8xf32>
    %107 = vector.shape_cast %106 : vector<2x1x1x8xf32> to vector<2x8xf32>
    %c0_107 = arith.constant 0 : index
    %c0_108 = arith.constant 0 : index
    %c3_109 = arith.constant 3 : index
    %c0_110 = arith.constant 0 : index
    %108 = vector.load %arg8[%c0_107, %c0_108, %c3_109, %c0_110] : memref<2x7x7x8xf32, #tpu.memory_space<vmem>>, vector<2x1x1x8xf32>
    %109 = vector.shape_cast %108 : vector<2x1x1x8xf32> to vector<2x8xf32>
    %c0_111 = arith.constant 0 : index
    %c0_112 = arith.constant 0 : index
    %c4_113 = arith.constant 4 : index
    %c0_114 = arith.constant 0 : index
    %110 = vector.load %arg8[%c0_111, %c0_112, %c4_113, %c0_114] : memref<2x7x7x8xf32, #tpu.memory_space<vmem>>, vector<2x1x1x8xf32>
    %111 = vector.shape_cast %110 : vector<2x1x1x8xf32> to vector<2x8xf32>
    %c0_115 = arith.constant 0 : index
    %c1_116 = arith.constant 1 : index
    %c2_117 = arith.constant 2 : index
    %c0_118 = arith.constant 0 : index
    %112 = vector.load %arg8[%c0_115, %c1_116, %c2_117, %c0_118] : memref<2x7x7x8xf32, #tpu.memory_space<vmem>>, vector<2x1x1x8xf32>
    %113 = vector.shape_cast %112 : vector<2x1x1x8xf32> to vector<2x8xf32>
    %c0_119 = arith.constant 0 : index
    %c1_120 = arith.constant 1 : index
    %c3_121 = arith.constant 3 : index
    %c0_122 = arith.constant 0 : index
    %114 = vector.load %arg8[%c0_119, %c1_120, %c3_121, %c0_122] : memref<2x7x7x8xf32, #tpu.memory_space<vmem>>, vector<2x1x1x8xf32>
    %115 = vector.shape_cast %114 : vector<2x1x1x8xf32> to vector<2x8xf32>
    %c0_123 = arith.constant 0 : index
    %c1_124 = arith.constant 1 : index
    %c4_125 = arith.constant 4 : index
    %c0_126 = arith.constant 0 : index
    %116 = vector.load %arg8[%c0_123, %c1_124, %c4_125, %c0_126] : memref<2x7x7x8xf32, #tpu.memory_space<vmem>>, vector<2x1x1x8xf32>
    %117 = vector.shape_cast %116 : vector<2x1x1x8xf32> to vector<2x8xf32>
    %c0_127 = arith.constant 0 : index
    %c2_128 = arith.constant 2 : index
    %c2_129 = arith.constant 2 : index
    %c0_130 = arith.constant 0 : index
    %118 = vector.load %arg8[%c0_127, %c2_128, %c2_129, %c0_130] : memref<2x7x7x8xf32, #tpu.memory_space<vmem>>, vector<2x1x1x8xf32>
    %119 = vector.shape_cast %118 : vector<2x1x1x8xf32> to vector<2x8xf32>
    %c0_131 = arith.constant 0 : index
    %c2_132 = arith.constant 2 : index
    %c3_133 = arith.constant 3 : index
    %c0_134 = arith.constant 0 : index
    %120 = vector.load %arg8[%c0_131, %c2_132, %c3_133, %c0_134] : memref<2x7x7x8xf32, #tpu.memory_space<vmem>>, vector<2x1x1x8xf32>
    %121 = vector.shape_cast %120 : vector<2x1x1x8xf32> to vector<2x8xf32>
    %c0_135 = arith.constant 0 : index
    %c2_136 = arith.constant 2 : index
    %c4_137 = arith.constant 4 : index
    %c0_138 = arith.constant 0 : index
    %122 = vector.load %arg8[%c0_135, %c2_136, %c4_137, %c0_138] : memref<2x7x7x8xf32, #tpu.memory_space<vmem>>, vector<2x1x1x8xf32>
    %123 = vector.shape_cast %122 : vector<2x1x1x8xf32> to vector<2x8xf32>
    %124 = tpu.concatenate %107, %109, %111, %113, %115, %117, %119, %121, %123 in 1 : vector<2x8xf32>, vector<2x8xf32>, vector<2x8xf32>, vector<2x8xf32>, vector<2x8xf32>, vector<2x8xf32>, vector<2x8xf32>, vector<2x8xf32>, vector<2x8xf32> -> vector<2x72xf32>
    %cst_139 = arith.constant dense<0.000000e+00> : vector<2x16xf32>
    %125 = tpu.matmul %124, %78, %cst_139 {dimension_numbers = #tpu.dot_dimension_numbers<[1], [0], [0], [1], [0, 0, 1, 1], [], []>} : vector<2x72xf32>, vector<72x16xf32>, vector<2x16xf32> -> vector<2x16xf32>
    %126 = vector.broadcast %79 : vector<1x16xf32> to vector<2x16xf32>
    %127 = arith.addf %125, %126 : vector<2x16xf32>
    %cst_140 = arith.constant 0.000000e+00 : f32
    %128 = vector.broadcast %cst_140 : f32 to vector<2x16xf32>
    %129 = arith.maximumf %127, %128 : vector<2x16xf32>
    %130 = arith.addf %105, %129 : vector<2x16xf32>
    %c0_141 = arith.constant 0 : index
    %c0_142 = arith.constant 0 : index
    %c4_143 = arith.constant 4 : index
    %c0_144 = arith.constant 0 : index
    %131 = vector.load %arg8[%c0_141, %c0_142, %c4_143, %c0_144] : memref<2x7x7x8xf32, #tpu.memory_space<vmem>>, vector<2x1x1x8xf32>
    %132 = vector.shape_cast %131 : vector<2x1x1x8xf32> to vector<2x8xf32>
    %c0_145 = arith.constant 0 : index
    %c0_146 = arith.constant 0 : index
    %c5_147 = arith.constant 5 : index
    %c0_148 = arith.constant 0 : index
    %133 = vector.load %arg8[%c0_145, %c0_146, %c5_147, %c0_148] : memref<2x7x7x8xf32, #tpu.memory_space<vmem>>, vector<2x1x1x8xf32>
    %134 = vector.shape_cast %133 : vector<2x1x1x8xf32> to vector<2x8xf32>
    %c0_149 = arith.constant 0 : index
    %c0_150 = arith.constant 0 : index
    %c6_151 = arith.constant 6 : index
    %c0_152 = arith.constant 0 : index
    %135 = vector.load %arg8[%c0_149, %c0_150, %c6_151, %c0_152] : memref<2x7x7x8xf32, #tpu.memory_space<vmem>>, vector<2x1x1x8xf32>
    %136 = vector.shape_cast %135 : vector<2x1x1x8xf32> to vector<2x8xf32>
    %c0_153 = arith.constant 0 : index
    %c1_154 = arith.constant 1 : index
    %c4_155 = arith.constant 4 : index
    %c0_156 = arith.constant 0 : index
    %137 = vector.load %arg8[%c0_153, %c1_154, %c4_155, %c0_156] : memref<2x7x7x8xf32, #tpu.memory_space<vmem>>, vector<2x1x1x8xf32>
    %138 = vector.shape_cast %137 : vector<2x1x1x8xf32> to vector<2x8xf32>
    %c0_157 = arith.constant 0 : index
    %c1_158 = arith.constant 1 : index
    %c5_159 = arith.constant 5 : index
    %c0_160 = arith.constant 0 : index
    %139 = vector.load %arg8[%c0_157, %c1_158, %c5_159, %c0_160] : memref<2x7x7x8xf32, #tpu.memory_space<vmem>>, vector<2x1x1x8xf32>
    %140 = vector.shape_cast %139 : vector<2x1x1x8xf32> to vector<2x8xf32>
    %c0_161 = arith.constant 0 : index
    %c1_162 = arith.constant 1 : index
    %c6_163 = arith.constant 6 : index
    %c0_164 = arith.constant 0 : index
    %141 = vector.load %arg8[%c0_161, %c1_162, %c6_163, %c0_164] : memref<2x7x7x8xf32, #tpu.memory_space<vmem>>, vector<2x1x1x8xf32>
    %142 = vector.shape_cast %141 : vector<2x1x1x8xf32> to vector<2x8xf32>
    %c0_165 = arith.constant 0 : index
    %c2_166 = arith.constant 2 : index
    %c4_167 = arith.constant 4 : index
    %c0_168 = arith.constant 0 : index
    %143 = vector.load %arg8[%c0_165, %c2_166, %c4_167, %c0_168] : memref<2x7x7x8xf32, #tpu.memory_space<vmem>>, vector<2x1x1x8xf32>
    %144 = vector.shape_cast %143 : vector<2x1x1x8xf32> to vector<2x8xf32>
    %c0_169 = arith.constant 0 : index
    %c2_170 = arith.constant 2 : index
    %c5_171 = arith.constant 5 : index
    %c0_172 = arith.constant 0 : index
    %145 = vector.load %arg8[%c0_169, %c2_170, %c5_171, %c0_172] : memref<2x7x7x8xf32, #tpu.memory_space<vmem>>, vector<2x1x1x8xf32>
    %146 = vector.shape_cast %145 : vector<2x1x1x8xf32> to vector<2x8xf32>
    %c0_173 = arith.constant 0 : index
    %c2_174 = arith.constant 2 : index
    %c6_175 = arith.constant 6 : index
    %c0_176 = arith.constant 0 : index
    %147 = vector.load %arg8[%c0_173, %c2_174, %c6_175, %c0_176] : memref<2x7x7x8xf32, #tpu.memory_space<vmem>>, vector<2x1x1x8xf32>
    %148 = vector.shape_cast %147 : vector<2x1x1x8xf32> to vector<2x8xf32>
    %149 = tpu.concatenate %132, %134, %136, %138, %140, %142, %144, %146, %148 in 1 : vector<2x8xf32>, vector<2x8xf32>, vector<2x8xf32>, vector<2x8xf32>, vector<2x8xf32>, vector<2x8xf32>, vector<2x8xf32>, vector<2x8xf32>, vector<2x8xf32> -> vector<2x72xf32>
    %cst_177 = arith.constant dense<0.000000e+00> : vector<2x16xf32>
    %150 = tpu.matmul %149, %78, %cst_177 {dimension_numbers = #tpu.dot_dimension_numbers<[1], [0], [0], [1], [0, 0, 1, 1], [], []>} : vector<2x72xf32>, vector<72x16xf32>, vector<2x16xf32> -> vector<2x16xf32>
    %151 = vector.broadcast %79 : vector<1x16xf32> to vector<2x16xf32>
    %152 = arith.addf %150, %151 : vector<2x16xf32>
    %cst_178 = arith.constant 0.000000e+00 : f32
    %153 = vector.broadcast %cst_178 : f32 to vector<2x16xf32>
    %154 = arith.maximumf %152, %153 : vector<2x16xf32>
    %155 = arith.addf %130, %154 : vector<2x16xf32>
    %c0_179 = arith.constant 0 : index
    %c2_180 = arith.constant 2 : index
    %c0_181 = arith.constant 0 : index
    %c0_182 = arith.constant 0 : index
    %156 = vector.load %arg8[%c0_179, %c2_180, %c0_181, %c0_182] : memref<2x7x7x8xf32, #tpu.memory_space<vmem>>, vector<2x1x1x8xf32>
    %157 = vector.shape_cast %156 : vector<2x1x1x8xf32> to vector<2x8xf32>
    %c0_183 = arith.constant 0 : index
    %c2_184 = arith.constant 2 : index
    %c1_185 = arith.constant 1 : index
    %c0_186 = arith.constant 0 : index
    %158 = vector.load %arg8[%c0_183, %c2_184, %c1_185, %c0_186] : memref<2x7x7x8xf32, #tpu.memory_space<vmem>>, vector<2x1x1x8xf32>
    %159 = vector.shape_cast %158 : vector<2x1x1x8xf32> to vector<2x8xf32>
    %c0_187 = arith.constant 0 : index
    %c2_188 = arith.constant 2 : index
    %c2_189 = arith.constant 2 : index
    %c0_190 = arith.constant 0 : index
    %160 = vector.load %arg8[%c0_187, %c2_188, %c2_189, %c0_190] : memref<2x7x7x8xf32, #tpu.memory_space<vmem>>, vector<2x1x1x8xf32>
    %161 = vector.shape_cast %160 : vector<2x1x1x8xf32> to vector<2x8xf32>
    %c0_191 = arith.constant 0 : index
    %c3_192 = arith.constant 3 : index
    %c0_193 = arith.constant 0 : index
    %c0_194 = arith.constant 0 : index
    %162 = vector.load %arg8[%c0_191, %c3_192, %c0_193, %c0_194] : memref<2x7x7x8xf32, #tpu.memory_space<vmem>>, vector<2x1x1x8xf32>
    %163 = vector.shape_cast %162 : vector<2x1x1x8xf32> to vector<2x8xf32>
    %c0_195 = arith.constant 0 : index
    %c3_196 = arith.constant 3 : index
    %c1_197 = arith.constant 1 : index
    %c0_198 = arith.constant 0 : index
    %164 = vector.load %arg8[%c0_195, %c3_196, %c1_197, %c0_198] : memref<2x7x7x8xf32, #tpu.memory_space<vmem>>, vector<2x1x1x8xf32>
    %165 = vector.shape_cast %164 : vector<2x1x1x8xf32> to vector<2x8xf32>
    %c0_199 = arith.constant 0 : index
    %c3_200 = arith.constant 3 : index
    %c2_201 = arith.constant 2 : index
    %c0_202 = arith.constant 0 : index
    %166 = vector.load %arg8[%c0_199, %c3_200, %c2_201, %c0_202] : memref<2x7x7x8xf32, #tpu.memory_space<vmem>>, vector<2x1x1x8xf32>
    %167 = vector.shape_cast %166 : vector<2x1x1x8xf32> to vector<2x8xf32>
    %c0_203 = arith.constant 0 : index
    %c4_204 = arith.constant 4 : index
    %c0_205 = arith.constant 0 : index
    %c0_206 = arith.constant 0 : index
    %168 = vector.load %arg8[%c0_203, %c4_204, %c0_205, %c0_206] : memref<2x7x7x8xf32, #tpu.memory_space<vmem>>, vector<2x1x1x8xf32>
    %169 = vector.shape_cast %168 : vector<2x1x1x8xf32> to vector<2x8xf32>
    %c0_207 = arith.constant 0 : index
    %c4_208 = arith.constant 4 : index
    %c1_209 = arith.constant 1 : index
    %c0_210 = arith.constant 0 : index
    %170 = vector.load %arg8[%c0_207, %c4_208, %c1_209, %c0_210] : memref<2x7x7x8xf32, #tpu.memory_space<vmem>>, vector<2x1x1x8xf32>
    %171 = vector.shape_cast %170 : vector<2x1x1x8xf32> to vector<2x8xf32>
    %c0_211 = arith.constant 0 : index
    %c4_212 = arith.constant 4 : index
    %c2_213 = arith.constant 2 : index
    %c0_214 = arith.constant 0 : index
    %172 = vector.load %arg8[%c0_211, %c4_212, %c2_213, %c0_214] : memref<2x7x7x8xf32, #tpu.memory_space<vmem>>, vector<2x1x1x8xf32>
    %173 = vector.shape_cast %172 : vector<2x1x1x8xf32> to vector<2x8xf32>
    %174 = tpu.concatenate %157, %159, %161, %163, %165, %167, %169, %171, %173 in 1 : vector<2x8xf32>, vector<2x8xf32>, vector<2x8xf32>, vector<2x8xf32>, vector<2x8xf32>, vector<2x8xf32>, vector<2x8xf32>, vector<2x8xf32>, vector<2x8xf32> -> vector<2x72xf32>
    %cst_215 = arith.constant dense<0.000000e+00> : vector<2x16xf32>
    %175 = tpu.matmul %174, %78, %cst_215 {dimension_numbers = #tpu.dot_dimension_numbers<[1], [0], [0], [1], [0, 0, 1, 1], [], []>} : vector<2x72xf32>, vector<72x16xf32>, vector<2x16xf32> -> vector<2x16xf32>
    %176 = vector.broadcast %79 : vector<1x16xf32> to vector<2x16xf32>
    %177 = arith.addf %175, %176 : vector<2x16xf32>
    %cst_216 = arith.constant 0.000000e+00 : f32
    %178 = vector.broadcast %cst_216 : f32 to vector<2x16xf32>
    %179 = arith.maximumf %177, %178 : vector<2x16xf32>
    %180 = arith.addf %155, %179 : vector<2x16xf32>
    %c0_217 = arith.constant 0 : index
    %c2_218 = arith.constant 2 : index
    %c2_219 = arith.constant 2 : index
    %c0_220 = arith.constant 0 : index
    %181 = vector.load %arg8[%c0_217, %c2_218, %c2_219, %c0_220] : memref<2x7x7x8xf32, #tpu.memory_space<vmem>>, vector<2x1x1x8xf32>
    %182 = vector.shape_cast %181 : vector<2x1x1x8xf32> to vector<2x8xf32>
    %c0_221 = arith.constant 0 : index
    %c2_222 = arith.constant 2 : index
    %c3_223 = arith.constant 3 : index
    %c0_224 = arith.constant 0 : index
    %183 = vector.load %arg8[%c0_221, %c2_222, %c3_223, %c0_224] : memref<2x7x7x8xf32, #tpu.memory_space<vmem>>, vector<2x1x1x8xf32>
    %184 = vector.shape_cast %183 : vector<2x1x1x8xf32> to vector<2x8xf32>
    %c0_225 = arith.constant 0 : index
    %c2_226 = arith.constant 2 : index
    %c4_227 = arith.constant 4 : index
    %c0_228 = arith.constant 0 : index
    %185 = vector.load %arg8[%c0_225, %c2_226, %c4_227, %c0_228] : memref<2x7x7x8xf32, #tpu.memory_space<vmem>>, vector<2x1x1x8xf32>
    %186 = vector.shape_cast %185 : vector<2x1x1x8xf32> to vector<2x8xf32>
    %c0_229 = arith.constant 0 : index
    %c3_230 = arith.constant 3 : index
    %c2_231 = arith.constant 2 : index
    %c0_232 = arith.constant 0 : index
    %187 = vector.load %arg8[%c0_229, %c3_230, %c2_231, %c0_232] : memref<2x7x7x8xf32, #tpu.memory_space<vmem>>, vector<2x1x1x8xf32>
    %188 = vector.shape_cast %187 : vector<2x1x1x8xf32> to vector<2x8xf32>
    %c0_233 = arith.constant 0 : index
    %c3_234 = arith.constant 3 : index
    %c3_235 = arith.constant 3 : index
    %c0_236 = arith.constant 0 : index
    %189 = vector.load %arg8[%c0_233, %c3_234, %c3_235, %c0_236] : memref<2x7x7x8xf32, #tpu.memory_space<vmem>>, vector<2x1x1x8xf32>
    %190 = vector.shape_cast %189 : vector<2x1x1x8xf32> to vector<2x8xf32>
    %c0_237 = arith.constant 0 : index
    %c3_238 = arith.constant 3 : index
    %c4_239 = arith.constant 4 : index
    %c0_240 = arith.constant 0 : index
    %191 = vector.load %arg8[%c0_237, %c3_238, %c4_239, %c0_240] : memref<2x7x7x8xf32, #tpu.memory_space<vmem>>, vector<2x1x1x8xf32>
    %192 = vector.shape_cast %191 : vector<2x1x1x8xf32> to vector<2x8xf32>
    %c0_241 = arith.constant 0 : index
    %c4_242 = arith.constant 4 : index
    %c2_243 = arith.constant 2 : index
    %c0_244 = arith.constant 0 : index
    %193 = vector.load %arg8[%c0_241, %c4_242, %c2_243, %c0_244] : memref<2x7x7x8xf32, #tpu.memory_space<vmem>>, vector<2x1x1x8xf32>
    %194 = vector.shape_cast %193 : vector<2x1x1x8xf32> to vector<2x8xf32>
    %c0_245 = arith.constant 0 : index
    %c4_246 = arith.constant 4 : index
    %c3_247 = arith.constant 3 : index
    %c0_248 = arith.constant 0 : index
    %195 = vector.load %arg8[%c0_245, %c4_246, %c3_247, %c0_248] : memref<2x7x7x8xf32, #tpu.memory_space<vmem>>, vector<2x1x1x8xf32>
    %196 = vector.shape_cast %195 : vector<2x1x1x8xf32> to vector<2x8xf32>
    %c0_249 = arith.constant 0 : index
    %c4_250 = arith.constant 4 : index
    %c4_251 = arith.constant 4 : index
    %c0_252 = arith.constant 0 : index
    %197 = vector.load %arg8[%c0_249, %c4_250, %c4_251, %c0_252] : memref<2x7x7x8xf32, #tpu.memory_space<vmem>>, vector<2x1x1x8xf32>
    %198 = vector.shape_cast %197 : vector<2x1x1x8xf32> to vector<2x8xf32>
    %199 = tpu.concatenate %182, %184, %186, %188, %190, %192, %194, %196, %198 in 1 : vector<2x8xf32>, vector<2x8xf32>, vector<2x8xf32>, vector<2x8xf32>, vector<2x8xf32>, vector<2x8xf32>, vector<2x8xf32>, vector<2x8xf32>, vector<2x8xf32> -> vector<2x72xf32>
    %cst_253 = arith.constant dense<0.000000e+00> : vector<2x16xf32>
    %200 = tpu.matmul %199, %78, %cst_253 {dimension_numbers = #tpu.dot_dimension_numbers<[1], [0], [0], [1], [0, 0, 1, 1], [], []>} : vector<2x72xf32>, vector<72x16xf32>, vector<2x16xf32> -> vector<2x16xf32>
    %201 = vector.broadcast %79 : vector<1x16xf32> to vector<2x16xf32>
    %202 = arith.addf %200, %201 : vector<2x16xf32>
    %cst_254 = arith.constant 0.000000e+00 : f32
    %203 = vector.broadcast %cst_254 : f32 to vector<2x16xf32>
    %204 = arith.maximumf %202, %203 : vector<2x16xf32>
    %205 = arith.addf %180, %204 : vector<2x16xf32>
    %c0_255 = arith.constant 0 : index
    %c2_256 = arith.constant 2 : index
    %c4_257 = arith.constant 4 : index
    %c0_258 = arith.constant 0 : index
    %206 = vector.load %arg8[%c0_255, %c2_256, %c4_257, %c0_258] : memref<2x7x7x8xf32, #tpu.memory_space<vmem>>, vector<2x1x1x8xf32>
    %207 = vector.shape_cast %206 : vector<2x1x1x8xf32> to vector<2x8xf32>
    %c0_259 = arith.constant 0 : index
    %c2_260 = arith.constant 2 : index
    %c5_261 = arith.constant 5 : index
    %c0_262 = arith.constant 0 : index
    %208 = vector.load %arg8[%c0_259, %c2_260, %c5_261, %c0_262] : memref<2x7x7x8xf32, #tpu.memory_space<vmem>>, vector<2x1x1x8xf32>
    %209 = vector.shape_cast %208 : vector<2x1x1x8xf32> to vector<2x8xf32>
    %c0_263 = arith.constant 0 : index
    %c2_264 = arith.constant 2 : index
    %c6_265 = arith.constant 6 : index
    %c0_266 = arith.constant 0 : index
    %210 = vector.load %arg8[%c0_263, %c2_264, %c6_265, %c0_266] : memref<2x7x7x8xf32, #tpu.memory_space<vmem>>, vector<2x1x1x8xf32>
    %211 = vector.shape_cast %210 : vector<2x1x1x8xf32> to vector<2x8xf32>
    %c0_267 = arith.constant 0 : index
    %c3_268 = arith.constant 3 : index
    %c4_269 = arith.constant 4 : index
    %c0_270 = arith.constant 0 : index
    %212 = vector.load %arg8[%c0_267, %c3_268, %c4_269, %c0_270] : memref<2x7x7x8xf32, #tpu.memory_space<vmem>>, vector<2x1x1x8xf32>
    %213 = vector.shape_cast %212 : vector<2x1x1x8xf32> to vector<2x8xf32>
    %c0_271 = arith.constant 0 : index
    %c3_272 = arith.constant 3 : index
    %c5_273 = arith.constant 5 : index
    %c0_274 = arith.constant 0 : index
    %214 = vector.load %arg8[%c0_271, %c3_272, %c5_273, %c0_274] : memref<2x7x7x8xf32, #tpu.memory_space<vmem>>, vector<2x1x1x8xf32>
    %215 = vector.shape_cast %214 : vector<2x1x1x8xf32> to vector<2x8xf32>
    %c0_275 = arith.constant 0 : index
    %c3_276 = arith.constant 3 : index
    %c6_277 = arith.constant 6 : index
    %c0_278 = arith.constant 0 : index
    %216 = vector.load %arg8[%c0_275, %c3_276, %c6_277, %c0_278] : memref<2x7x7x8xf32, #tpu.memory_space<vmem>>, vector<2x1x1x8xf32>
    %217 = vector.shape_cast %216 : vector<2x1x1x8xf32> to vector<2x8xf32>
    %c0_279 = arith.constant 0 : index
    %c4_280 = arith.constant 4 : index
    %c4_281 = arith.constant 4 : index
    %c0_282 = arith.constant 0 : index
    %218 = vector.load %arg8[%c0_279, %c4_280, %c4_281, %c0_282] : memref<2x7x7x8xf32, #tpu.memory_space<vmem>>, vector<2x1x1x8xf32>
    %219 = vector.shape_cast %218 : vector<2x1x1x8xf32> to vector<2x8xf32>
    %c0_283 = arith.constant 0 : index
    %c4_284 = arith.constant 4 : index
    %c5_285 = arith.constant 5 : index
    %c0_286 = arith.constant 0 : index
    %220 = vector.load %arg8[%c0_283, %c4_284, %c5_285, %c0_286] : memref<2x7x7x8xf32, #tpu.memory_space<vmem>>, vector<2x1x1x8xf32>
    %221 = vector.shape_cast %220 : vector<2x1x1x8xf32> to vector<2x8xf32>
    %c0_287 = arith.constant 0 : index
    %c4_288 = arith.constant 4 : index
    %c6_289 = arith.constant 6 : index
    %c0_290 = arith.constant 0 : index
    %222 = vector.load %arg8[%c0_287, %c4_288, %c6_289, %c0_290] : memref<2x7x7x8xf32, #tpu.memory_space<vmem>>, vector<2x1x1x8xf32>
    %223 = vector.shape_cast %222 : vector<2x1x1x8xf32> to vector<2x8xf32>
    %224 = tpu.concatenate %207, %209, %211, %213, %215, %217, %219, %221, %223 in 1 : vector<2x8xf32>, vector<2x8xf32>, vector<2x8xf32>, vector<2x8xf32>, vector<2x8xf32>, vector<2x8xf32>, vector<2x8xf32>, vector<2x8xf32>, vector<2x8xf32> -> vector<2x72xf32>
    %cst_291 = arith.constant dense<0.000000e+00> : vector<2x16xf32>
    %225 = tpu.matmul %224, %78, %cst_291 {dimension_numbers = #tpu.dot_dimension_numbers<[1], [0], [0], [1], [0, 0, 1, 1], [], []>} : vector<2x72xf32>, vector<72x16xf32>, vector<2x16xf32> -> vector<2x16xf32>
    %226 = vector.broadcast %79 : vector<1x16xf32> to vector<2x16xf32>
    %227 = arith.addf %225, %226 : vector<2x16xf32>
    %cst_292 = arith.constant 0.000000e+00 : f32
    %228 = vector.broadcast %cst_292 : f32 to vector<2x16xf32>
    %229 = arith.maximumf %227, %228 : vector<2x16xf32>
    %230 = arith.addf %205, %229 : vector<2x16xf32>
    %c0_293 = arith.constant 0 : index
    %c4_294 = arith.constant 4 : index
    %c0_295 = arith.constant 0 : index
    %c0_296 = arith.constant 0 : index
    %231 = vector.load %arg8[%c0_293, %c4_294, %c0_295, %c0_296] : memref<2x7x7x8xf32, #tpu.memory_space<vmem>>, vector<2x1x1x8xf32>
    %232 = vector.shape_cast %231 : vector<2x1x1x8xf32> to vector<2x8xf32>
    %c0_297 = arith.constant 0 : index
    %c4_298 = arith.constant 4 : index
    %c1_299 = arith.constant 1 : index
    %c0_300 = arith.constant 0 : index
    %233 = vector.load %arg8[%c0_297, %c4_298, %c1_299, %c0_300] : memref<2x7x7x8xf32, #tpu.memory_space<vmem>>, vector<2x1x1x8xf32>
    %234 = vector.shape_cast %233 : vector<2x1x1x8xf32> to vector<2x8xf32>
    %c0_301 = arith.constant 0 : index
    %c4_302 = arith.constant 4 : index
    %c2_303 = arith.constant 2 : index
    %c0_304 = arith.constant 0 : index
    %235 = vector.load %arg8[%c0_301, %c4_302, %c2_303, %c0_304] : memref<2x7x7x8xf32, #tpu.memory_space<vmem>>, vector<2x1x1x8xf32>
    %236 = vector.shape_cast %235 : vector<2x1x1x8xf32> to vector<2x8xf32>
    %c0_305 = arith.constant 0 : index
    %c5_306 = arith.constant 5 : index
    %c0_307 = arith.constant 0 : index
    %c0_308 = arith.constant 0 : index
    %237 = vector.load %arg8[%c0_305, %c5_306, %c0_307, %c0_308] : memref<2x7x7x8xf32, #tpu.memory_space<vmem>>, vector<2x1x1x8xf32>
    %238 = vector.shape_cast %237 : vector<2x1x1x8xf32> to vector<2x8xf32>
    %c0_309 = arith.constant 0 : index
    %c5_310 = arith.constant 5 : index
    %c1_311 = arith.constant 1 : index
    %c0_312 = arith.constant 0 : index
    %239 = vector.load %arg8[%c0_309, %c5_310, %c1_311, %c0_312] : memref<2x7x7x8xf32, #tpu.memory_space<vmem>>, vector<2x1x1x8xf32>
    %240 = vector.shape_cast %239 : vector<2x1x1x8xf32> to vector<2x8xf32>
    %c0_313 = arith.constant 0 : index
    %c5_314 = arith.constant 5 : index
    %c2_315 = arith.constant 2 : index
    %c0_316 = arith.constant 0 : index
    %241 = vector.load %arg8[%c0_313, %c5_314, %c2_315, %c0_316] : memref<2x7x7x8xf32, #tpu.memory_space<vmem>>, vector<2x1x1x8xf32>
    %242 = vector.shape_cast %241 : vector<2x1x1x8xf32> to vector<2x8xf32>
    %c0_317 = arith.constant 0 : index
    %c6_318 = arith.constant 6 : index
    %c0_319 = arith.constant 0 : index
    %c0_320 = arith.constant 0 : index
    %243 = vector.load %arg8[%c0_317, %c6_318, %c0_319, %c0_320] : memref<2x7x7x8xf32, #tpu.memory_space<vmem>>, vector<2x1x1x8xf32>
    %244 = vector.shape_cast %243 : vector<2x1x1x8xf32> to vector<2x8xf32>
    %c0_321 = arith.constant 0 : index
    %c6_322 = arith.constant 6 : index
    %c1_323 = arith.constant 1 : index
    %c0_324 = arith.constant 0 : index
    %245 = vector.load %arg8[%c0_321, %c6_322, %c1_323, %c0_324] : memref<2x7x7x8xf32, #tpu.memory_space<vmem>>, vector<2x1x1x8xf32>
    %246 = vector.shape_cast %245 : vector<2x1x1x8xf32> to vector<2x8xf32>
    %c0_325 = arith.constant 0 : index
    %c6_326 = arith.constant 6 : index
    %c2_327 = arith.constant 2 : index
    %c0_328 = arith.constant 0 : index
    %247 = vector.load %arg8[%c0_325, %c6_326, %c2_327, %c0_328] : memref<2x7x7x8xf32, #tpu.memory_space<vmem>>, vector<2x1x1x8xf32>
    %248 = vector.shape_cast %247 : vector<2x1x1x8xf32> to vector<2x8xf32>
    %249 = tpu.concatenate %232, %234, %236, %238, %240, %242, %244, %246, %248 in 1 : vector<2x8xf32>, vector<2x8xf32>, vector<2x8xf32>, vector<2x8xf32>, vector<2x8xf32>, vector<2x8xf32>, vector<2x8xf32>, vector<2x8xf32>, vector<2x8xf32> -> vector<2x72xf32>
    %cst_329 = arith.constant dense<0.000000e+00> : vector<2x16xf32>
    %250 = tpu.matmul %249, %78, %cst_329 {dimension_numbers = #tpu.dot_dimension_numbers<[1], [0], [0], [1], [0, 0, 1, 1], [], []>} : vector<2x72xf32>, vector<72x16xf32>, vector<2x16xf32> -> vector<2x16xf32>
    %251 = vector.broadcast %79 : vector<1x16xf32> to vector<2x16xf32>
    %252 = arith.addf %250, %251 : vector<2x16xf32>
    %cst_330 = arith.constant 0.000000e+00 : f32
    %253 = vector.broadcast %cst_330 : f32 to vector<2x16xf32>
    %254 = arith.maximumf %252, %253 : vector<2x16xf32>
    %255 = arith.addf %230, %254 : vector<2x16xf32>
    %c0_331 = arith.constant 0 : index
    %c4_332 = arith.constant 4 : index
    %c2_333 = arith.constant 2 : index
    %c0_334 = arith.constant 0 : index
    %256 = vector.load %arg8[%c0_331, %c4_332, %c2_333, %c0_334] : memref<2x7x7x8xf32, #tpu.memory_space<vmem>>, vector<2x1x1x8xf32>
    %257 = vector.shape_cast %256 : vector<2x1x1x8xf32> to vector<2x8xf32>
    %c0_335 = arith.constant 0 : index
    %c4_336 = arith.constant 4 : index
    %c3_337 = arith.constant 3 : index
    %c0_338 = arith.constant 0 : index
    %258 = vector.load %arg8[%c0_335, %c4_336, %c3_337, %c0_338] : memref<2x7x7x8xf32, #tpu.memory_space<vmem>>, vector<2x1x1x8xf32>
    %259 = vector.shape_cast %258 : vector<2x1x1x8xf32> to vector<2x8xf32>
    %c0_339 = arith.constant 0 : index
    %c4_340 = arith.constant 4 : index
    %c4_341 = arith.constant 4 : index
    %c0_342 = arith.constant 0 : index
    %260 = vector.load %arg8[%c0_339, %c4_340, %c4_341, %c0_342] : memref<2x7x7x8xf32, #tpu.memory_space<vmem>>, vector<2x1x1x8xf32>
    %261 = vector.shape_cast %260 : vector<2x1x1x8xf32> to vector<2x8xf32>
    %c0_343 = arith.constant 0 : index
    %c5_344 = arith.constant 5 : index
    %c2_345 = arith.constant 2 : index
    %c0_346 = arith.constant 0 : index
    %262 = vector.load %arg8[%c0_343, %c5_344, %c2_345, %c0_346] : memref<2x7x7x8xf32, #tpu.memory_space<vmem>>, vector<2x1x1x8xf32>
    %263 = vector.shape_cast %262 : vector<2x1x1x8xf32> to vector<2x8xf32>
    %c0_347 = arith.constant 0 : index
    %c5_348 = arith.constant 5 : index
    %c3_349 = arith.constant 3 : index
    %c0_350 = arith.constant 0 : index
    %264 = vector.load %arg8[%c0_347, %c5_348, %c3_349, %c0_350] : memref<2x7x7x8xf32, #tpu.memory_space<vmem>>, vector<2x1x1x8xf32>
    %265 = vector.shape_cast %264 : vector<2x1x1x8xf32> to vector<2x8xf32>
    %c0_351 = arith.constant 0 : index
    %c5_352 = arith.constant 5 : index
    %c4_353 = arith.constant 4 : index
    %c0_354 = arith.constant 0 : index
    %266 = vector.load %arg8[%c0_351, %c5_352, %c4_353, %c0_354] : memref<2x7x7x8xf32, #tpu.memory_space<vmem>>, vector<2x1x1x8xf32>
    %267 = vector.shape_cast %266 : vector<2x1x1x8xf32> to vector<2x8xf32>
    %c0_355 = arith.constant 0 : index
    %c6_356 = arith.constant 6 : index
    %c2_357 = arith.constant 2 : index
    %c0_358 = arith.constant 0 : index
    %268 = vector.load %arg8[%c0_355, %c6_356, %c2_357, %c0_358] : memref<2x7x7x8xf32, #tpu.memory_space<vmem>>, vector<2x1x1x8xf32>
    %269 = vector.shape_cast %268 : vector<2x1x1x8xf32> to vector<2x8xf32>
    %c0_359 = arith.constant 0 : index
    %c6_360 = arith.constant 6 : index
    %c3_361 = arith.constant 3 : index
    %c0_362 = arith.constant 0 : index
    %270 = vector.load %arg8[%c0_359, %c6_360, %c3_361, %c0_362] : memref<2x7x7x8xf32, #tpu.memory_space<vmem>>, vector<2x1x1x8xf32>
    %271 = vector.shape_cast %270 : vector<2x1x1x8xf32> to vector<2x8xf32>
    %c0_363 = arith.constant 0 : index
    %c6_364 = arith.constant 6 : index
    %c4_365 = arith.constant 4 : index
    %c0_366 = arith.constant 0 : index
    %272 = vector.load %arg8[%c0_363, %c6_364, %c4_365, %c0_366] : memref<2x7x7x8xf32, #tpu.memory_space<vmem>>, vector<2x1x1x8xf32>
    %273 = vector.shape_cast %272 : vector<2x1x1x8xf32> to vector<2x8xf32>
    %274 = tpu.concatenate %257, %259, %261, %263, %265, %267, %269, %271, %273 in 1 : vector<2x8xf32>, vector<2x8xf32>, vector<2x8xf32>, vector<2x8xf32>, vector<2x8xf32>, vector<2x8xf32>, vector<2x8xf32>, vector<2x8xf32>, vector<2x8xf32> -> vector<2x72xf32>
    %cst_367 = arith.constant dense<0.000000e+00> : vector<2x16xf32>
    %275 = tpu.matmul %274, %78, %cst_367 {dimension_numbers = #tpu.dot_dimension_numbers<[1], [0], [0], [1], [0, 0, 1, 1], [], []>} : vector<2x72xf32>, vector<72x16xf32>, vector<2x16xf32> -> vector<2x16xf32>
    %276 = vector.broadcast %79 : vector<1x16xf32> to vector<2x16xf32>
    %277 = arith.addf %275, %276 : vector<2x16xf32>
    %cst_368 = arith.constant 0.000000e+00 : f32
    %278 = vector.broadcast %cst_368 : f32 to vector<2x16xf32>
    %279 = arith.maximumf %277, %278 : vector<2x16xf32>
    %280 = arith.addf %255, %279 : vector<2x16xf32>
    %c0_369 = arith.constant 0 : index
    %c4_370 = arith.constant 4 : index
    %c4_371 = arith.constant 4 : index
    %c0_372 = arith.constant 0 : index
    %281 = vector.load %arg8[%c0_369, %c4_370, %c4_371, %c0_372] : memref<2x7x7x8xf32, #tpu.memory_space<vmem>>, vector<2x1x1x8xf32>
    %282 = vector.shape_cast %281 : vector<2x1x1x8xf32> to vector<2x8xf32>
    %c0_373 = arith.constant 0 : index
    %c4_374 = arith.constant 4 : index
    %c5_375 = arith.constant 5 : index
    %c0_376 = arith.constant 0 : index
    %283 = vector.load %arg8[%c0_373, %c4_374, %c5_375, %c0_376] : memref<2x7x7x8xf32, #tpu.memory_space<vmem>>, vector<2x1x1x8xf32>
    %284 = vector.shape_cast %283 : vector<2x1x1x8xf32> to vector<2x8xf32>
    %c0_377 = arith.constant 0 : index
    %c4_378 = arith.constant 4 : index
    %c6_379 = arith.constant 6 : index
    %c0_380 = arith.constant 0 : index
    %285 = vector.load %arg8[%c0_377, %c4_378, %c6_379, %c0_380] : memref<2x7x7x8xf32, #tpu.memory_space<vmem>>, vector<2x1x1x8xf32>
    %286 = vector.shape_cast %285 : vector<2x1x1x8xf32> to vector<2x8xf32>
    %c0_381 = arith.constant 0 : index
    %c5_382 = arith.constant 5 : index
    %c4_383 = arith.constant 4 : index
    %c0_384 = arith.constant 0 : index
    %287 = vector.load %arg8[%c0_381, %c5_382, %c4_383, %c0_384] : memref<2x7x7x8xf32, #tpu.memory_space<vmem>>, vector<2x1x1x8xf32>
    %288 = vector.shape_cast %287 : vector<2x1x1x8xf32> to vector<2x8xf32>
    %c0_385 = arith.constant 0 : index
    %c5_386 = arith.constant 5 : index
    %c5_387 = arith.constant 5 : index
    %c0_388 = arith.constant 0 : index
    %289 = vector.load %arg8[%c0_385, %c5_386, %c5_387, %c0_388] : memref<2x7x7x8xf32, #tpu.memory_space<vmem>>, vector<2x1x1x8xf32>
    %290 = vector.shape_cast %289 : vector<2x1x1x8xf32> to vector<2x8xf32>
    %c0_389 = arith.constant 0 : index
    %c5_390 = arith.constant 5 : index
    %c6_391 = arith.constant 6 : index
    %c0_392 = arith.constant 0 : index
    %291 = vector.load %arg8[%c0_389, %c5_390, %c6_391, %c0_392] : memref<2x7x7x8xf32, #tpu.memory_space<vmem>>, vector<2x1x1x8xf32>
    %292 = vector.shape_cast %291 : vector<2x1x1x8xf32> to vector<2x8xf32>
    %c0_393 = arith.constant 0 : index
    %c6_394 = arith.constant 6 : index
    %c4_395 = arith.constant 4 : index
    %c0_396 = arith.constant 0 : index
    %293 = vector.load %arg8[%c0_393, %c6_394, %c4_395, %c0_396] : memref<2x7x7x8xf32, #tpu.memory_space<vmem>>, vector<2x1x1x8xf32>
    %294 = vector.shape_cast %293 : vector<2x1x1x8xf32> to vector<2x8xf32>
    %c0_397 = arith.constant 0 : index
    %c6_398 = arith.constant 6 : index
    %c5_399 = arith.constant 5 : index
    %c0_400 = arith.constant 0 : index
    %295 = vector.load %arg8[%c0_397, %c6_398, %c5_399, %c0_400] : memref<2x7x7x8xf32, #tpu.memory_space<vmem>>, vector<2x1x1x8xf32>
    %296 = vector.shape_cast %295 : vector<2x1x1x8xf32> to vector<2x8xf32>
    %c0_401 = arith.constant 0 : index
    %c6_402 = arith.constant 6 : index
    %c6_403 = arith.constant 6 : index
    %c0_404 = arith.constant 0 : index
    %297 = vector.load %arg8[%c0_401, %c6_402, %c6_403, %c0_404] : memref<2x7x7x8xf32, #tpu.memory_space<vmem>>, vector<2x1x1x8xf32>
    %298 = vector.shape_cast %297 : vector<2x1x1x8xf32> to vector<2x8xf32>
    %299 = tpu.concatenate %282, %284, %286, %288, %290, %292, %294, %296, %298 in 1 : vector<2x8xf32>, vector<2x8xf32>, vector<2x8xf32>, vector<2x8xf32>, vector<2x8xf32>, vector<2x8xf32>, vector<2x8xf32>, vector<2x8xf32>, vector<2x8xf32> -> vector<2x72xf32>
    %cst_405 = arith.constant dense<0.000000e+00> : vector<2x16xf32>
    %300 = tpu.matmul %299, %78, %cst_405 {dimension_numbers = #tpu.dot_dimension_numbers<[1], [0], [0], [1], [0, 0, 1, 1], [], []>} : vector<2x72xf32>, vector<72x16xf32>, vector<2x16xf32> -> vector<2x16xf32>
    %301 = vector.broadcast %79 : vector<1x16xf32> to vector<2x16xf32>
    %302 = arith.addf %300, %301 : vector<2x16xf32>
    %cst_406 = arith.constant 0.000000e+00 : f32
    %303 = vector.broadcast %cst_406 : f32 to vector<2x16xf32>
    %304 = arith.maximumf %302, %303 : vector<2x16xf32>
    %305 = arith.addf %280, %304 : vector<2x16xf32>
    %cst_407 = arith.constant 0.111111112 : f32
    %306 = vector.broadcast %cst_407 : f32 to vector<2x16xf32>
    %307 = arith.mulf %305, %306 : vector<2x16xf32>
    %c0_408 = arith.constant 0 : index
    %c0_409 = arith.constant 0 : index
    %308 = vector.load %arg5[%c0_408, %c0_409] : memref<16x32xf32, #tpu.memory_space<vmem>>, vector<16x32xf32>
    %cst_410 = arith.constant dense<0.000000e+00> : vector<2x32xf32>
    %309 = tpu.matmul %307, %308, %cst_410 {dimension_numbers = #tpu.dot_dimension_numbers<[1], [0], [0], [1], [0, 0, 1, 1], [], []>} : vector<2x16xf32>, vector<16x32xf32>, vector<2x32xf32> -> vector<2x32xf32>
    %c0_411 = arith.constant 0 : index
    %c0_412 = arith.constant 0 : index
    %310 = vector.load %arg6[%c0_411, %c0_412] : memref<1x32xf32, #tpu.memory_space<vmem>>, vector<1x32xf32>
    %311 = vector.broadcast %310 : vector<1x32xf32> to vector<2x32xf32>
    %312 = arith.addf %309, %311 : vector<2x32xf32>
    %c0_413 = arith.constant 0 : index
    %c0_414 = arith.constant 0 : index
    %313 = vector.load %arg7[%c0_413, %c0_414] : memref<2x32xf32, #tpu.memory_space<vmem>>, vector<2x32xf32>
    tpu.vector_store %arg7[%c0_413, %c0_414], %312 {strides = array<i32>} : memref<2x32xf32, #tpu.memory_space<vmem>>, vector<2x32xf32>,
    return
  }
}

</mosaic_0001>

<bundles_post_ra>
// kernel: simple_cnn_forward.1
= control target key start
LH: loop header
LB: loop body
LE: loop exit
PB: predicated region body
PF: predicated region fallthrough
CT: control target
= control target key end

     0   :  { %v4356_v2 = vmov 1   ;;  %v4354_v3 = vmov 0   ;;  %s4346_s0 = inlined_call_operand.vmem [shape: f32[2,2,8,8,2], index: 0, kind: input, shape index: {}]   ;;  %s4347_s1 = inlined_call_operand.vmem [shape: f32[9,8], index: 1, kind: input, shape index: {}]   ;;  %s4348_s2 = inlined_call_operand.vmem [shape: f32[1,8], index: 2, kind: input, shape index: {}]   ;;  %s4349_s3 = inlined_call_operand.vmem [shape: f32[72,16], index: 3, kind: input, shape index: {}]   ;;  %s4350_s4 = inlined_call_operand.vmem [shape: f32[1,16], index: 4, kind: input, shape index: {}]   ;;  %s4351_s5 = inlined_call_operand.vmem [shape: f32[16,32], index: 5, kind: input, shape index: {}]   ;;  %s4352_s6 = inlined_call_operand.vmem [shape: f32[1,32], index: 6, kind: input, shape index: {}]   ;;  %s4353_s7 = inlined_call_operand.hbm [shape: f32[2,32], index: 7, kind: output, shape index: {}]  }
   0x1   :  { %v3058_v0 = vld [vmem:[%s4346_s0 + $0x80] sm:$0x7f]  ;;  %2923 = vset.pattern.permute.xlu0 %v4356_v2  ;;  %2924 = vset.pattern.permute.xlu1 %v4354_v3  ;;  %v35_v4 = vld [vmem:[%s4346_s0 + $0x88] sm:$0x7f]  ;;  %v2443_v6 = vld [vmem:[%s4346_s0 + $0xd0] sm:$0x7f] }
   0x2   :  { %v27_v1 = vld [vmem:[%s4346_s0] sm:$0x7f]  ;;  %160 = vperm.xlu0 %2923, %v3058_v0   ;;  %v3083_v8 = vld [vmem:[%s4346_s0 + $0x8] sm:$0x7f] }
   0x3   :  { %44 = vperm.xlu1 %2924, %v27_v1   ;;  %v2434_v5 = vld [vmem:[%s4346_s0 + $0x40] sm:$0x7f]  ;;  %v28_v9 = vld [vmem:[%s4346_s0 + $0x8] sm:$0x7f] }
   0x4   :  { %v226_v7 = vld [vmem:[%s4346_s0 + $0x81] sm:$0x7f] }
   0x6   :  { %164 = vperm.xlu0 %2923, %v35_v4  }
   0x7   :  { %84 = vperm.xlu1 %2924, %v35_v4  }
   0xa   :  { %456 = vperm.xlu0 %2923, %v2434_v5  }
   0xb   :  { %2925 = vset.pattern.permute.xlu1 %v4356_v2 }
   0xc   :  { %132 = vperm.xlu1 %2925, %v27_v1  }
   0xe   :  { %492 = vperm.xlu0 %2923, %v2443_v6  }
  0x10   :  { %2926 = vset.pattern.permute.xlu1 %v4354_v3 }
  0x11   :  { %271 = vperm.xlu1 %2926, %v226_v7  }
  0x12   :  { %780 = vperm.xlu0 %2923, %v3083_v8  }
  0x13   :  { %12 = vsyncpa [#allocation4], 0  ;;  %v3092_v10 = vld [vmem:[%s4346_s0 + $0xa0] sm:$0x7f]  ;;  %v3099_v11 = vld [vmem:[%s4346_s0 + $0x58] sm:$0x7f] }
  0x14   :  { %v219_v12 = vld [vmem:[%s4346_s0 + $0x1] sm:$0x7f]  ;;  %v36_v16 = vld [vmem:[%s4346_s0 + $0x90] sm:$0x7f]  ;;  %v3128_v17 = vld [vmem:[%s4346_s0 + $0xa8] sm:$0x7f] }
  0x15   :  { %2927 = vset.pattern.permute.xlu1 %v4356_v2  ;;  %v3109_v13 = vld [vmem:[%s4346_s0 + $0xe0] sm:$0x7f]  ;;  %v3135_v18 = vld [vmem:[%s4346_s0 + $0x28] sm:$0x7f]  ;;  %v3141_v19 = vld [vmem:[%s4346_s0 + $0xb0] sm:$0x7f] }
  0x16   :  { %136 = vperm.xlu1 %2927, %v28_v9   ;;  %176 = vperm.xlu0 %2923, %v3092_v10   ;;  %v2441_v14 = vld [vmem:[%s4346_s0 + $0xc0] sm:$0x7f]  ;;  %v29_v20 = vld [vmem:[%s4346_s0 + $0x10] sm:$0x7f]  ;;  %v3151_v21 = vld [vmem:[%s4346_s0 + $0x68] sm:$0x7f] }
  0x17   :  { %v3118_v15 = vld [vmem:[%s4346_s0 + $0x20] sm:$0x7f]  ;;  %v3157_v22 = vld [vmem:[%s4346_s0 + $0xf0] sm:$0x7f]  ;;  %v2435_v23 = vld [vmem:[%s4346_s0 + $0x48] sm:$0x7f] }
  0x18   :  { %v3167_v24 = vld [vmem:[%s4346_s0 + $0x30] sm:$0x7f]  ;;  %v2442_v25 = vld [vmem:[%s4346_s0 + $0xc8] sm:$0x7f]  ;;  %v3177_v26 = vld [vmem:[%s4346_s0 + $0xb8] sm:$0x7f] }
  0x19   :  { %v2457_v27 = vld [vmem:[%s4346_s0 + $0xc1] sm:$0x7f]  ;;  %v3187_v28 = vld [vmem:[%s4346_s0 + $0x38] sm:$0x7f]  ;;  %v2458_v29 = vld [vmem:[%s4346_s0 + $0xc9] sm:$0x7f] }
  0x1a   :  { %2928 = vset.pattern.permute.xlu1 %v4354_v3  ;;  %468 = vperm.xlu0 %2923, %v3099_v11   ;;  %v227_v30 = vld [vmem:[%s4346_s0 + $0x89] sm:$0x7f]  ;;  %v2436_v31 = vld [vmem:[%s4346_s0 + $0x50] sm:$0x7f]  ;;  %v2450_v38 = vld [vmem:[%s4346_s0 + $0x41] sm:$0x7f] }
  0x1b   :  { %236 = vperm.xlu1 %2928, %v219_v12   ;;  %v2451_v32 = vld [vmem:[%s4346_s0 + $0x49] sm:$0x7f]  ;;  %v228_v35 = vld [vmem:[%s4346_s0 + $0x91] sm:$0x7f]  ;;  %v2474_v41 = vld [vmem:[%s4346_s0 + $0x98] sm:$0x7f] }
  0x1c   :  { %v220_v33 = vld [vmem:[%s4346_s0 + $0x9] sm:$0x7f]  ;;  %v221_v36 = vld [vmem:[%s4346_s0 + $0x11] sm:$0x7f]  ;;  %v2467_v46 = vld [vmem:[%s4346_s0 + $0x18] sm:$0x7f] }
  0x1d   :  { %v2472_v34 = vld [vmem:[%s4346_s0 + $0x88] sm:$0x7f]  ;;  %v2466_v37 = vld [vmem:[%s4346_s0 + $0x10] sm:$0x7f]  ;;  %v2490_v52 = vld [vmem:[%s4346_s0 + $0x99] sm:$0x7f] }
  0x1e   :  { %500 = vperm.xlu0 %2923, %v3109_v13   ;;  %v2473_v39 = vld [vmem:[%s4346_s0 + $0x90] sm:$0x7f]  ;;  %v2488_v40 = vld [vmem:[%s4346_s0 + $0x89] sm:$0x7f]  ;;  %v2483_v55 = vld [vmem:[%s4346_s0 + $0x19] sm:$0x7f] }
  0x1f   :  { %389 = vperm.xlu1 %2928, %v2441_v14   ;;  %v2459_v42 = vld [vmem:[%s4346_s0 + $0xd1] sm:$0x7f]  ;;  %v2481_v44 = vld [vmem:[%s4346_s0 + $0x9] sm:$0x7f]  ;;  %v37_v56 = vld [vmem:[%s4346_s0 + $0x98] sm:$0x7f] }
  0x20   :  { %v2452_v43 = vld [vmem:[%s4346_s0 + $0x51] sm:$0x7f]  ;;  %v30_v59 = vld [vmem:[%s4346_s0 + $0x18] sm:$0x7f]  ;;  %vm1019_vm0 = vcmask 63488   ;;  %vm1067_vm1 = vcmask 1041409  }
  0x21   :  { %v2489_v45 = vld [vmem:[%s4346_s0 + $0x91] sm:$0x7f]  ;;  %v229_v62 = vld [vmem:[%s4346_s0 + $0x99] sm:$0x7f]  ;;  %s3003_s16 = smov 24   ;;  %s3004_s19 = smov 40  }
  0x22   :  { %792 = vperm.xlu0 %2923, %v3118_v15   ;;  %v2482_v49 = vld [vmem:[%s4346_s0 + $0x11] sm:$0x7f]  ;;  %v222_v7 = vld [vmem:[%s4346_s0 + $0x19] sm:$0x7f]  ;;  %s3005_s22 = smov 56   ;;  %s3006_s23 = smov 8  }
  0x23   :  { %2929 = vset.pattern.permute.xlu1 %v4356_v2  ;;  %s3007_s26 = smov 32   ;;  %s3008_s27 = smov 48   ;;  %vm3012_vm2 = vmmov 0   ;;  %vm1128_vm3 = vcmask 130048   ;;  %vm1126_vm4 = vcmask 64512   ;;  %vm1130_vm5 = vcmask 195584  }
  0x24   :  { %168 = vperm.xlu1 %2929, %v36_v16   ;;  %s3009_s30 = smov 64   ;;  %vm1132_vm6 = vcmask 261120   ;;  %vm1134_vm7 = vcmask 326656   ;;  %vm1136_vm8 = vcmask 392192   ;;  %vm1138_vm9 = vcmask 457728  }
  0x25   :  { %vm1140_vm10 = vcmask 523264   ;;  %vm1148_vm11 = vcmask 588800   ;;  %vm2415_vm12 = vcmask 254976  }
  0x26   :  { %824 = vperm.xlu0 %2923, %v3128_v17  }
  0x28   :  { %2930 = vset.pattern.permute.xlu1 %v4354_v3 }
  0x29   :  { %354 = vperm.xlu1 %2930, %v2434_v5  }
  0x2a   :  { %796 = vperm.xlu0 %2923, %v3135_v18  }
  0x2d   :  { %2931 = vset.pattern.permute.xlu1 %v4356_v2 }
  0x2e   :  { %484 = vperm.xlu1 %2931, %v2441_v14   ;;  %184 = vperm.xlu0 %2923, %v3141_v19   ;;  %v3328_v14 = vld [vmem:[%s4346_s0 + $0xa0] sm:$0x7f] }
  0x32   :  { %140 = vperm.xlu1 %2931, %v29_v20   ;;  %476 = vperm.xlu0 %2923, %v3151_v21  }
  0x36   :  { %2932 = vset.pattern.permute.xlu1 %v4354_v3  ;;  %508 = vperm.xlu0 %2923, %v3157_v22  }
  0x37   :  { %359 = vperm.xlu1 %2932, %v2435_v23  }
  0x3a   :  { %800 = vperm.xlu0 %2923, %v3167_v24  }
  0x3b   :  { %2933 = vset.pattern.permute.xlu1 %v4356_v2 }
  0x3c   :  { %488 = vperm.xlu1 %2933, %v2442_v25  }
  0x3e   :  { %832 = vperm.xlu0 %2923, %v3177_v26  }
  0x40   :  { %2934 = vset.pattern.permute.xlu1 %v4354_v3 }
  0x41   :  { %595 = vperm.xlu1 %2934, %v2457_v27   ;;  %v2454_v27 = vld [vmem:[%s4346_s0 + $0x61] sm:$0x7f] }
  0x42   :  { %804 = vperm.xlu0 %2923, %v3187_v28  }
  0x45   :  { %399 = vperm.xlu1 %2934, %v2443_v6  }
  0x46   :  { %2965 = vset.pattern.permute.xlu0 %v4354_v3 }
  0x47   :  { %79 = vperm.xlu0 %2965, %v3058_v0   ;;  %v31_v0 = vld [vmem:[%s4346_s0 + $0x20] sm:$0x7f] }
  0x49   :  { %2935 = vset.pattern.permute.xlu1 %v4356_v2 }
  0x4a   :  { %460 = vperm.xlu1 %2935, %v2435_v23   ;;  %v230_v23 = vld [vmem:[%s4346_s0 + $0xa1] sm:$0x7f] }
  0x4b   :  { %49 = vperm.xlu0 %2965, %v28_v9  }
  0x4e   :  { %2936 = vset.pattern.permute.xlu1 %v4354_v3 }
  0x4f   :  { %600 = vperm.xlu1 %2936, %v2458_v29   ;;  %276 = vperm.xlu0 %2965, %v227_v30  }
  0x53   :  { %364 = vperm.xlu1 %2936, %v2436_v31   ;;  %89 = vperm.xlu0 %2965, %v36_v16  }
  0x57   :  { %565 = vperm.xlu1 %2936, %v2451_v32   ;;  %241 = vperm.xlu0 %2965, %v220_v33   ;;  %v3361_v32 = vld [vmem:[%s4346_s0 + $0x28] sm:$0x7f] }
  0x5b   :  { %678 = vperm.xlu1 %2936, %v3083_v8   ;;  %394 = vperm.xlu0 %2965, %v2442_v25   ;;  %v223_v8 = vld [vmem:[%s4346_s0 + $0x21] sm:$0x7f] }
  0x5f   :  { %2937 = vset.pattern.permute.xlu1 %v4356_v2  ;;  %54 = vperm.xlu0 %2965, %v29_v20  }
  0x60   :  { %808 = vperm.xlu1 %2937, %v2472_v34  }
  0x63   :  { %281 = vperm.xlu0 %2965, %v228_v35   ;;  %v231_v35 = vld [vmem:[%s4346_s0 + $0xa9] sm:$0x7f] }
  0x64   :  { %464 = vperm.xlu1 %2937, %v2436_v31  }
  0x67   :  { %246 = vperm.xlu0 %2965, %v221_v36  }
  0x68   :  { %2938 = vset.pattern.permute.xlu1 %v4354_v3 }
  0x69   :  { %683 = vperm.xlu1 %2938, %v2466_v37  }
  0x6b   :  { %560 = vperm.xlu0 %2965, %v2450_v38  }
  0x6d   :  { %2939 = vset.pattern.permute.xlu1 %v4356_v2 }
  0x6e   :  { %812 = vperm.xlu1 %2939, %v2473_v39  }
  0x6f   :  { %713 = vperm.xlu0 %2965, %v2472_v34  }
  0x72   :  { %2940 = vset.pattern.permute.xlu1 %v4354_v3 }
  0x73   :  { %919 = vperm.xlu1 %2940, %v2488_v40   ;;  %718 = vperm.xlu0 %2965, %v2473_v39   ;;  %v3383_v39 = vld [vmem:[%s4346_s0 + $0x30] sm:$0x7f]  ;;  %v2438_v40 = vld [vmem:[%s4346_s0 + $0x60] sm:$0x7f] }
  0x77   :  { %723 = vperm.xlu1 %2940, %v2474_v41   ;;  %605 = vperm.xlu0 %2965, %v2459_v42  }
  0x7b   :  { %2941 = vset.pattern.permute.xlu1 %v4356_v2  ;;  %570 = vperm.xlu0 %2965, %v2452_v43   ;;  %v2453_v43 = vld [vmem:[%s4346_s0 + $0x59] sm:$0x7f] }
  0x7c   :  { %784 = vperm.xlu1 %2941, %v2466_v37   ;;  %v2460_v37 = vld [vmem:[%s4346_s0 + $0xd9] sm:$0x7f] }
  0x7f   :  { %884 = vperm.xlu0 %2965, %v2481_v44  }
  0x80   :  { %2942 = vset.pattern.permute.xlu1 %v4354_v3 }
  0x81   :  { %924 = vperm.xlu1 %2942, %v2489_v45   ;;  %v3255_v47 = vpop.permute.xlu0 %160  ;;  %v225_v45 = vld [vmem:[%s4346_s0 + $0x31] sm:$0x7f] }
  0x82   :  { %v3257_v48 = vpop.permute.xlu1 %44 }
  0x83   :  { %688 = vperm.xlu0 %2965, %v2467_v46  }
  0x85   :  { %2943 = vset.pattern.permute.xlu1 %v4356_v2  ;;  %v3263_v50 = vpop.permute.xlu0 %164 }
  0x86   :  { %816 = vperm.xlu1 %2943, %v2474_v41   ;;  %v3265_v51 = vpop.permute.xlu1 %84 }
  0x87   :  { %889 = vperm.xlu0 %2965, %v2482_v49  }
  0x89   :  { %v3270_v53 = vpop.permute.xlu0 %456 }
  0x8a   :  { %788 = vperm.xlu1 %2943, %v2467_v46  }
  0x8b   :  { %v3272_v54 = vpop.permute.xlu1 %132  ;;  %929 = vperm.xlu0 %2965, %v2490_v52   ;;  %v3410_v52 = vld [vmem:[%s4346_s0 + $0xb0] sm:$0x7f] }
  0x8d   :  { %v3281_v57 = vpop.permute.xlu0 %492 }
  0x8e   :  { %2944 = vset.pattern.permute.xlu1 %v4354_v3 }
  0x8f   :  { %894 = vperm.xlu1 %2944, %v2483_v55   ;;  %94 = vperm.xlu0 %2965, %v37_v56   ;;  %v2461_v55 = vld [vmem:[%s4346_s0 + $0xe1] sm:$0x7f] }
  0x90   :  { %v3283_v58 = vpop.permute.xlu1 %271 }
  0x91   :  { %v3288_v60 = vpop.permute.xlu0 %780 }
  0x93   :  { %2945 = vset.pattern.permute.xlu1 %v4356_v2  ;;  %59 = vperm.xlu0 %2965, %v30_v59  }
  0x94   :  { %172 = vperm.xlu1 %2945, %v37_v56  }
  0x95   :  { %v3291_v61 = vpop.permute.xlu1 %136  ;;  %v3296_v63 = vpop.permute.xlu0 %176 }
  0x97   :  { %286 = vperm.xlu0 %2965, %v229_v62   ;;  %v2456_v62 = vld [vmem:[%s4346_s0 + $0x71] sm:$0x7f] }
  0x98   :  { %144 = vperm.xlu1 %2945, %v30_v59  }
  0x99   :  { %v3303_v4 = vpop.permute.xlu0 %468 }
  0x9a   :  { %v3301_v1 = vpop.permute.xlu1 %236 }
  0x9b   :  { %64 = vperm.xlu0 %2965, %v31_v0  }
  0x9c   :  { %2946 = vset.pattern.permute.xlu1 %v4354_v3 }
  0x9d   :  { %99 = vperm.xlu1 %2946, %v3092_v10   ;;  %v3309_v6 = vpop.permute.xlu0 %500  ;;  %v2444_v10 = vld [vmem:[%s4346_s0 + $0xd8] sm:$0x7f] }
  0x9e   :  { %v3307_v5 = vpop.permute.xlu1 %389 }
  0x9f   :  { %369 = vperm.xlu0 %2965, %v3099_v11  }
  0xa1   :  { %251 = vperm.xlu1 %2946, %v222_v7   ;;  %v3318_v9 = vpop.permute.xlu0 %792 }
  0xa2   :  { %4358 = vst [vmem:[#allocation6_spill] sm:$0xff] %v3318_v9 }
  0xa3   :  { %v3323_v12 = vpop.permute.xlu1 %168  ;;  %256 = vperm.xlu0 %2965, %v223_v8   ;;  %v2487_v8 = vld [vmem:[%s4346_s0 + $0x39] sm:$0x7f] }
  0xa5   :  { %404 = vperm.xlu1 %2946, %v2444_v10   ;;  %v3330_v11 = vpop.permute.xlu0 %824 }
  0xa6   :  { %4359 = vst [vmem:[#allocation7_spill] sm:$0xff] %v3330_v11 }
  0xa7   :  { %728 = vperm.xlu0 %2965, %v3328_v14  }
  0xa8   :  { %v3333_v16 = vpop.permute.xlu1 %354 }
  0xa9   :  { %2947 = vset.pattern.permute.xlu1 %v4356_v2  ;;  %v3336_v20 = vpop.permute.xlu0 %796 }
  0xaa   :  { %148 = vperm.xlu1 %2947, %v31_v0   ;;  %4360 = vst [vmem:[#allocation8_spill] sm:$0xff] %v3336_v20 }
  0xab   :  { %693 = vperm.xlu0 %2965, %v3118_v15   ;;  %v2485_v15 = vld [vmem:[%s4346_s0 + $0x29] sm:$0x7f] }
  0xad   :  { %v3342_v25 = vpop.permute.xlu1 %484  ;;  %v3348_v29 = vpop.permute.xlu0 %184 }
  0xae   :  { %2948 = vset.pattern.permute.xlu1 %v4354_v3  ;;  %4361 = vst [vmem:[#allocation9_spill] sm:$0xff] %v3348_v29 }
  0xaf   :  { %291 = vperm.xlu1 %2948, %v230_v23   ;;  %580 = vperm.xlu0 %2965, %v2454_v27   ;;  %v2491_v27 = vld [vmem:[%s4346_s0 + $0xa1] sm:$0x7f] }
  0xb1   :  { %v3350_v30 = vpop.permute.xlu1 %140  ;;  %v3355_v31 = vpop.permute.xlu0 %476 }
  0xb2   :  { %4362 = vst [vmem:[#allocation10_spill] sm:$0xff] %v3355_v31 }
  0xb3   :  { %2949 = vset.pattern.permute.xlu1 %v4356_v2  ;;  %904 = vperm.xlu0 %2965, %v2485_v15   ;;  %v3453_v15 = vld [vmem:[%s4347_s1] ss:$0 sm:$0xff] }
  0xb4   :  { %496 = vperm.xlu1 %2949, %v2444_v10  }
  0xb5   :  { %v3365_v34 = vpop.permute.xlu0 %508 }
  0xb6   :  { %v3363_v33 = vpop.permute.xlu1 %359  ;;  %4363 = vst [vmem:[#allocation11_spill] sm:$0xff] %v3365_v34 }
  0xb7   :  { %69 = vperm.xlu0 %2965, %v3361_v32  }
  0xb8   :  { %2950 = vset.pattern.permute.xlu1 %v4354_v3 }
  0xb9   :  { %409 = vperm.xlu1 %2950, %v3109_v13   ;;  %v3373_v36 = vpop.permute.xlu0 %800 }
  0xba   :  { %4364 = vst [vmem:[#allocation12_spill] sm:$0xff] %v3373_v36 }
  0xbb   :  { %v3378_v38 = vpop.permute.xlu1 %488  ;;  %296 = vperm.xlu0 %2965, %v231_v35  }
  0xbd   :  { %610 = vperm.xlu1 %2950, %v2460_v37   ;;  %v3385_v13 = vpop.permute.xlu0 %832 }
  0xbe   :  { %4365 = vst [vmem:[#allocation13_spill] sm:$0xff] %v3385_v13  ;;  %v3492_v13 = vld [vmem:[%s4347_s1 + $0x4] ss:$0 sm:$0xff] }
  0xbf   :  { %74 = vperm.xlu0 %2965, %v3383_v39  }
  0xc0   :  { %v3391_v41 = vpop.permute.xlu1 %595 }
  0xc1   :  { %374 = vperm.xlu1 %2950, %v2438_v40   ;;  %v3393_v42 = vpop.permute.xlu0 %804 }
  0xc2   :  { %4366 = vst [vmem:[#allocation14_spill] sm:$0xff] %v3393_v42 }
  0xc3   :  { %379 = vperm.xlu0 %2965, %v3151_v21  }
  0xc4   :  { %v3399_v44 = vpop.permute.xlu1 %399 }
  0xc5   :  { %575 = vperm.xlu1 %2950, %v2453_v43  }
  0xc6   :  { %v80_v46 = vpop.permute.xlu0 %79 }
  0xc7   :  { %266 = vperm.xlu0 %2965, %v225_v45   ;;  %v123_v37 = vmul.f32 %v3453_v15, %v80_v46  ;;  %v3474_v46 = vld [vmem:[%s4347_s1 + $0x3] ss:$0 sm:$0xff] }
  0xc9   :  { %2951 = vset.pattern.permute.xlu1 %v4356_v2  ;;  %v3405_v49 = vpop.permute.xlu1 %460 }
  0xca   :  { %472 = vperm.xlu1 %2951, %v2438_v40   ;;  %v3412_v21 = vpop.permute.xlu0 %49  ;;  %v3461_v40 = vld [vmem:[%s4347_s1 + $0x2] ss:$0 sm:$0xff] }
  0xcb   :  { %738 = vperm.xlu0 %2965, %v3410_v52  }
  0xce   :  { %2952 = vset.pattern.permute.xlu1 %v4354_v3  ;;  %v3419_v56 = vpop.permute.xlu1 %600  ;;  %v277_v59 = vpop.permute.xlu0 %276 }
  0xcf   :  { %615 = vperm.xlu1 %2952, %v2461_v55   ;;  %703 = vperm.xlu0 %2965, %v3167_v24   ;;  %v316_v36 = vmul.f32 %v3461_v40, %v277_v59 }
  0xd2   :  { %v3425_v0 = vpop.permute.xlu1 %364  ;;  %v3427_v7 = vpop.permute.xlu0 %89 }
  0xd3   :  { %2953 = vset.pattern.permute.xlu1 %v4356_v2  ;;  %590 = vperm.xlu0 %2965, %v2456_v62   ;;  %v315_v62 = vmul.f32 %v3461_v40, %v3283_v58  ;;  %v2492_v58 = vld [vmem:[%s4346_s0 + $0xa9] sm:$0x7f] }
  0xd4   :  { %820 = vperm.xlu1 %2953, %v3328_v14   ;;  %v3448_v14 = vld [vmem:[%s4347_s1 + $0x1] ss:$0 sm:$0xff] }
  0xd5   :  { %v192_v9 = vmul.f32 %v3448_v14, %v3291_v61 }
  0xd6   :  { %v3434_v10 = vpop.permute.xlu1 %565  ;;  %v3436_v24 = vpop.permute.xlu0 %241 }
  0xd7   :  { %914 = vperm.xlu0 %2965, %v2487_v8  }
  0xd8   :  { %2954 = vset.pattern.permute.xlu1 %v4354_v3 }
  0xd9   :  { %733 = vperm.xlu1 %2954, %v3128_v17   ;;  %v198_v17 = vmul.f32 %v3448_v14, %v3255_v47  ;;  %v2484_v47 = vld [vmem:[%s4346_s0 + $0x21] sm:$0x7f] }
  0xda   :  { %v3440_v23 = vpop.permute.xlu1 %678  ;;  %v395_v35 = vpop.permute.xlu0 %394 }
  0xdb   :  { %v212_v55 = vadd.f32 %v198_v17, %v123_v37  ;;  %v434_v59 = vmul.f32 %v3474_v46, %v395_v35  ;;  %v117_v35 = vmul.f32 %v3453_v15, %v3412_v21  ;;  %v523_v21 = vmul.f32 %v3492_v13, %v3378_v38 }
  0xdd   :  { %934 = vperm.xlu1 %2954, %v2491_v27   ;;  %v329_v3 = vadd.f32 %v315_v62, %v212_v55  ;;  %v191_v55 = vmul.f32 %v3448_v14, %v3272_v54  ;;  %v39_v62 = vld [vmem:[%s4346_s0 + $0xa8] sm:$0x7f]  ;;  %v116_v54 = vmul.f32 %v3453_v15, %v3257_v48  ;;  %v3524_v48 = vld [vmem:[%s4347_s1 + $0x7] ss:$0 sm:$0xff] }
  0xde   :  { %v3463_v43 = vpop.permute.xlu0 %54 }
  0xdf   :  { %v809_v45 = vpop.permute.xlu1 %808  ;;  %v205_v34 = vadd.f32 %v191_v55, %v116_v54  ;;  %v4367_v54 = vmov 1  }
  0xe1   :  { %698 = vperm.xlu1 %2954, %v3135_v18   ;;  %v433_v18 = vmul.f32 %v3474_v46, %v3307_v5  ;;  %v522_v5 = vmul.f32 %v3492_v13, %v3342_v25  ;;  %v308_v25 = vmul.f32 %v3461_v40, %v3301_v1  ;;  %v3529_v1 = vld [vmem:[%s4347_s1 + $0x6] ss:$0 sm:$0xff] }
  0xe2   :  { %v3476_v8 = vpop.permute.xlu0 %281 }
  0xe3   :  { %v3478_v27 = vpop.permute.xlu1 %464  ;;  %v447_v37 = vadd.f32 %v433_v18, %v329_v3  ;;  %v199_v3 = vmul.f32 %v3448_v14, %v3263_v50  ;;  %v3508_v18 = vld [vmem:[%s4347_s1 + $0x5] ss:$0 sm:$0xff]  ;;  %v322_v55 = vadd.f32 %v308_v25, %v205_v34  ;;  %v846_v34 = vmul.f32 %v3524_v48, %v809_v45  ;;  %v3555_v45 = vld [vmem:[%s4348_s2] ss:$0 sm:$0xff] }
  0xe4   :  { %v639_v31 = vmul.f32 %v3508_v18, %v3391_v41  ;;  %v3536_v41 = vld [vmem:[%s4347_s1 + $0x8] ss:$0 sm:$0xff] }
  0xe5   :  { %899 = vperm.xlu1 %2954, %v2484_v47   ;;  %v124_v47 = vmul.f32 %v3453_v15, %v3265_v51  ;;  %v536_v42 = vadd.f32 %v522_v5, %v447_v37  ;;  %v426_v51 = vmul.f32 %v3474_v46, %v3333_v16 }
  0xe6   :  { %v3485_v17 = vpop.permute.xlu0 %246 }
  0xe7   :  { %v213_v29 = vadd.f32 %v199_v3, %v124_v47  ;;  %v653_v5 = vadd.f32 %v639_v31, %v536_v42  ;;  %v515_v3 = vmul.f32 %v3492_v13, %v3270_v53  ;;  %v440_v11 = vadd.f32 %v426_v51, %v322_v55 }
  0xe8   :  { %v3487_v2 = vpop.permute.xlu1 %683  ;;  %v309_v53 = vmul.f32 %v3461_v40, %v3436_v24  ;;  %v125_v51 = vmul.f32 %v3453_v15, %v3427_v7  ;;  %v427_v7 = vmul.f32 %v3474_v46, %v3363_v33  ;;  %v224_v33 = vld [vmem:[%s4346_s0 + $0x29] sm:$0x7f] }
  0xe9   :  { %939 = vperm.xlu1 %2954, %v2492_v58   ;;  %v330_v47 = vadd.f32 %v316_v36, %v213_v29 }
  0xea   :  { %v561_v58 = vpop.permute.xlu0 %560 }
  0xeb   :  { %v448_v25 = vadd.f32 %v434_v59, %v330_v47  ;;  %v632_v29 = vmul.f32 %v3508_v18, %v561_v58  ;;  %v529_v59 = vadd.f32 %v515_v3, %v440_v11  ;;  %v200_v58 = vmul.f32 %v3448_v14, %v3323_v12 }
  0xec   :  { %v640_v11 = vmul.f32 %v3508_v18, %v3419_v56  ;;  %v750_v12 = vmul.f32 %v3529_v1, %v3440_v23  ;;  %v193_v23 = vmul.f32 %v3448_v14, %v3350_v30 }
  0xed   :  { %104 = vperm.xlu1 %2954, %v39_v62   ;;  %v3515_v50 = vpop.permute.xlu1 %812  ;;  %v537_v55 = vadd.f32 %v523_v21, %v448_v25  ;;  %v646_v47 = vadd.f32 %v632_v29, %v529_v59  ;;  %v214_v3 = vadd.f32 %v200_v58, %v125_v51  ;;  %v435_v29 = vmul.f32 %v3474_v46, %v3399_v44 }
  0xee   :  { %v714_v37 = vpop.permute.xlu0 %713  ;;  %v524_v44 = vmul.f32 %v3492_v13, %v3281_v57 }
  0xef   :  { %v757_v16 = vmul.f32 %v3529_v1, %v714_v37 }
  0xf1   :  { %2955 = vset.pattern.permute.xlu1 %v4367_v54  ;;  %v771_v31 = vadd.f32 %v757_v16, %v653_v5  ;;  %v317_v16 = vmul.f32 %v3461_v40, %v3476_v8  ;;  %v118_v8 = vmul.f32 %v3453_v15, %v3463_v43  ;;  %v310_v43 = vmul.f32 %v3461_v40, %v3485_v17 }
  0xf2   :  { %180 = vperm.xlu1 %2955, %v39_v62   ;;  %v920_v42 = vpop.permute.xlu1 %919  ;;  %v719_v20 = vpop.permute.xlu0 %718  ;;  %v206_v62 = vadd.f32 %v192_v9, %v117_v35 }
  0xf3   :  { %v963_v37 = vmul.f32 %v3536_v41, %v920_v42  ;;  %v860_v36 = vadd.f32 %v846_v34, %v771_v31  ;;  %v4368_v34 = vmov 0   ;;  %v654_v31 = vadd.f32 %v640_v11, %v537_v55 }
  0xf4   :  { %v323_v5 = vadd.f32 %v309_v53, %v206_v62  ;;  %v207_v21 = vadd.f32 %v193_v23, %v118_v8  ;;  %v847_v62 = vmul.f32 %v3524_v48, %v3515_v50  ;;  %v633_v50 = vmul.f32 %v3508_v18, %v3434_v10 }
  0xf5   :  { %v977_v61 = vadd.f32 %v963_v37, %v860_v36  ;;  %v764_v37 = vadd.f32 %v750_v12, %v646_v47  ;;  %v516_v36 = vmul.f32 %v3492_v13, %v3405_v49  ;;  %v428_v11 = vmul.f32 %v3474_v46, %v3425_v0 }
  0xf6   :  { %152 = vperm.xlu1 %2955, %v3361_v32   ;;  %v3560_v24 = vpop.permute.xlu1 %723  ;;  %v606_v38 = vpop.permute.xlu0 %605  ;;  %v758_v32 = vmul.f32 %v3529_v1, %v719_v20  ;;  %v441_v25 = vadd.f32 %v427_v7, %v323_v5  ;;  %v331_v20 = vadd.f32 %v317_v16, %v214_v3  ;;  %v324_v49 = vadd.f32 %v310_v43, %v207_v21 }
  0xf7   :  { %v998_v9 = vadd.f32 %v3555_v45, %v977_v61  ;;  %v751_v16 = vmul.f32 %v3529_v1, %v3487_v2  ;;  %v641_v47 = vmul.f32 %v3508_v18, %v606_v38 }
  0xf8   :  { %v772_v53 = vadd.f32 %v758_v32, %v654_v31  ;;  %v449_v30 = vadd.f32 %v435_v29, %v331_v20  ;;  %v530_v59 = vadd.f32 %v516_v36, %v441_v25  ;;  %v442_v8 = vadd.f32 %v428_v11, %v324_v49 }
  0xf9   :  { %v1012_v35 = vmax.f32 %v998_v9, 0.0  ;;  %v517_v20 = vmul.f32 %v3492_v13, %v3478_v27 }
  0xfa   :  { %2956 = vset.pattern.permute.xlu1 %v4368_v34  ;;  %v571_v42 = vpop.permute.xlu0 %570  ;;  %v861_v55 = vadd.f32 %v847_v62, %v772_v53  ;;  %v647_v57 = vadd.f32 %v633_v50, %v530_v59  ;;  %v538_v3 = vadd.f32 %v524_v44, %v449_v30 }
  0xfb   :  { %109 = vperm.xlu1 %2956, %v3141_v19   ;;  %v785_v56 = vpop.permute.xlu1 %784  ;;  %1027 = vst.msk [vmem:[#allocation2 + $0x38] sm:$0x7f] %vm1019_vm0, %v1012_v35  ;;  %v839_v19 = vmul.f32 %v3524_v48, %v3288_v60  ;;  %v2446_v60 = vld [vmem:[%s4346_s0 + $0xe8] sm:$0x7f]  ;;  %v634_v0 = vmul.f32 %v3508_v18, %v571_v42 }
  0xfc   :  { %v840_v12 = vmul.f32 %v3524_v48, %v785_v56  ;;  %v765_v2 = vadd.f32 %v751_v16, %v647_v57  ;;  %v655_v25 = vadd.f32 %v641_v47, %v538_v3  ;;  %v759_v56 = vmul.f32 %v3529_v1, %v3560_v24  ;;  %v232_v24 = vld [vmem:[%s4346_s0 + $0xb1] sm:$0x7f] }
  0xfd   :  { %v853_v61 = vadd.f32 %v839_v19, %v764_v37  ;;  %v531_v19 = vadd.f32 %v517_v20, %v442_v8 }
  0xfe   :  { %v885_v51 = vpop.permute.xlu0 %884  ;;  %v854_v23 = vadd.f32 %v840_v12, %v765_v2  ;;  %v773_v29 = vadd.f32 %v759_v56, %v655_v25  ;;  %v2440_v25 = vld [vmem:[%s4346_s0 + $0x70] sm:$0x7f]  ;;  %v2455_v56 = vld [vmem:[%s4346_s0 + $0x69] sm:$0x7f] }
  0xff   :  { %261 = vperm.xlu1 %2956, %v224_v33   ;;  %v956_v17 = vmul.f32 %v3536_v41, %v885_v51  ;;  %v648_v21 = vadd.f32 %v634_v0, %v531_v19 }
 0x100   :  { %v925_v58 = vpop.permute.xlu1 %924 }
 0x101   :  { %v964_v5 = vmul.f32 %v3536_v41, %v925_v58  ;;  %v970_v9 = vadd.f32 %v956_v17, %v853_v61 }
 0x102   :  { %v689_v7 = vpop.permute.xlu0 %688 }
 0x103   :  { %v978_v32 = vadd.f32 %v964_v5, %v861_v55  ;;  %414 = vperm.xlu1 %2956, %v2446_v60   ;;  %v991_v35 = vadd.f32 %v3555_v45, %v970_v9  ;;  %v752_v27 = vmul.f32 %v3529_v1, %v689_v7 }
 0x105   :  { %v999_v10 = vadd.f32 %v3555_v45, %v978_v32  ;;  %v817_v31 = vpop.permute.xlu1 %816  ;;  %v1005_v38 = vmax.f32 %v991_v35, 0.0  ;;  %v766_v61 = vadd.f32 %v752_v27, %v648_v21  ;;  %v2462_v35 = vld [vmem:[%s4346_s0 + $0xe9] sm:$0x7f] }
 0x106   :  { %v890_v33 = vpop.permute.xlu0 %889  ;;  %v848_v43 = vmul.f32 %v3524_v48, %v817_v31 }
 0x107   :  { %v1013_v37 = vmax.f32 %v999_v10, 0.0  ;;  %2957 = vset.pattern.permute.xlu1 %v4367_v54  ;;  %1020 = vst.msk [vmem:[#allocation2] sm:$0x7f] %vm1019_vm0, %v1005_v38  ;;  %v957_v53 = vmul.f32 %v3536_v41, %v890_v33 }
 0x108   :  { %156 = vperm.xlu1 %2957, %v3383_v39   ;;  %v862_v30 = vadd.f32 %v848_v43, %v773_v29 }
 0x109   :  { %1028 = vst.msk [vmem:[#allocation2 + $0x40] sm:$0x7f] %vm1019_vm0, %v1013_v37  ;;  %v789_v42 = vpop.permute.xlu1 %788  ;;  %v971_v36 = vadd.f32 %v957_v53, %v854_v23  ;;  %v1225_v37 = vld [vmem:[#allocation2 + $0x3b] sm:$0x1] }
 0x10a   :  { %v841_v62 = vmul.f32 %v3524_v48, %v789_v42  ;;  %v930_v51 = vpop.permute.xlu0 %929  ;;  %v1239_v43 = vrot.slane %v1225_v37, 7  ;;  %v1047_v37 = vld [vmem:[#allocation2 + $0x39] sm:$0x1] }
 0x10b   :  { %v992_v59 = vadd.f32 %v3555_v45, %v971_v36  ;;  %v965_v39 = vmul.f32 %v3536_v41, %v930_v51  ;;  %v2463_v36 = vld [vmem:[%s4346_s0 + $0xf1] sm:$0x7f] }
 0x10c   :  { %2958 = vset.pattern.permute.xlu1 %v4368_v34  ;;  %v855_v49 = vadd.f32 %v841_v62, %v766_v61 }
 0x10d   :  { %301 = vperm.xlu1 %2958, %v232_v24   ;;  %v1006_v17 = vmax.f32 %v992_v59, 0.0  ;;  %v979_v58 = vadd.f32 %v965_v39, %v862_v30 }
 0x10e   :  { %v895_v44 = vpop.permute.xlu1 %894  ;;  %v1224_v23 = vld [vmem:[#allocation2 + $0x3] sm:$0x1]  ;;  %v95_v21 = vpop.permute.xlu0 %94 }
 0x10f   :  { %v958_v55 = vmul.f32 %v3536_v41, %v895_v44  ;;  %1021 = vst.msk [vmem:[#allocation2 + $0x8] sm:$0x7f] %vm1019_vm0, %v1006_v17  ;;  %v1000_v5 = vadd.f32 %v3555_v45, %v979_v58  ;;  %v1240_v19 = vsel %vm1067_vm1, %v1239_v43, %v1224_v23  ;;  %v1072_v23 = vrot.slane %v1047_v37, 7 }
 0x110   :  { %v1052_v11 = vld [vmem:[#allocation2 + $0x40] sm:$0x1]  ;;  %v1229_v27 = vld [vmem:[#allocation2 + $0x43] sm:$0x1]  ;;  %v1231_v62 = vld [vmem:[#allocation2 + $0x44] sm:$0x1] }
 0x111   :  { %v972_v50 = vadd.f32 %v958_v55, %v855_v49  ;;  %2959 = vset.pattern.permute.xlu1 %v4367_v54  ;;  %v1014_v16 = vmax.f32 %v1000_v5, 0.0  ;;  %v1086_v7 = vrot.slane %v1052_v11, 7  ;;  %v1256_v24 = vrot.slane %v1229_v27, 7  ;;  %v1049_v27 = vld [vmem:[#allocation2 + $0x3a] sm:$0x1] }
 0x112   :  { %504 = vperm.xlu1 %2959, %v2446_v60   ;;  %v1056_v60 = vld [vmem:[#allocation2 + $0x42] sm:$0x1]  ;;  %v1263_v61 = vrot.slane %v1231_v62, 7  ;;  %v60_v44 = vpop.permute.xlu0 %59  ;;  %v1054_v62 = vld [vmem:[#allocation2 + $0x41] sm:$0x1] }
 0x113   :  { %v993_v47 = vadd.f32 %v3555_v45, %v972_v50  ;;  %v3635_v9 = vpop.permute.xlu1 %172  ;;  %1029 = vst.msk [vmem:[#allocation2 + $0x48] sm:$0x7f] %vm1019_vm0, %v1014_v16  ;;  %v1100_v10 = vrot.slane %v1056_v60, 7 }
 0x115   :  { %v1007_v32 = vmax.f32 %v993_v47, 0.0 }
 0x116   :  { %2960 = vset.pattern.permute.xlu1 %v4368_v34  ;;  %v1051_v3 = vld [vmem:[#allocation2 + $0x8] sm:$0x1]  ;;  %v1055_v8 = vld [vmem:[#allocation2 + $0xa] sm:$0x1]  ;;  %v1228_v29 = vld [vmem:[#allocation2 + $0xb] sm:$0x1] }
 0x117   :  { %1022 = vst.msk [vmem:[#allocation2 + $0x10] sm:$0x7f] %vm1019_vm0, %v1007_v32  ;;  %419 = vperm.xlu1 %2960, %v3157_v22   ;;  %v3641_v57 = vpop.permute.xlu1 %144  ;;  %v1087_v12 = vsel %vm1067_vm1, %v1086_v7, %v1051_v3  ;;  %v1101_v22 = vsel %vm1067_vm1, %v1100_v10, %v1055_v8  ;;  %v1257_v51 = vsel %vm1067_vm1, %v1256_v24, %v1228_v29  ;;  %v1230_v30 = vld [vmem:[#allocation2 + $0xc] sm:$0x1]  ;;  %v2493_v7 = vld [vmem:[%s4346_s0 + $0xb1] sm:$0x7f] }
 0x118   :  { %1088 = vrot.lane.b32.xlu0 %v1087_v12, %s3003_s16  ;;  %v3682_v17 = vsel %vm1067_vm1, %v1263_v61, %v1230_v30  ;;  %v126_v29 = vmul.f32 %v3453_v15, %v95_v21  ;;  %v1079_v61 = vrot.slane %v1049_v27, 7 }
 0x11a   :  { %v1061_v31 = vld [vmem:[#allocation2 + $0x49] sm:$0x1]  ;;  %v1063_v59 = vld [vmem:[#allocation2 + $0x4a] sm:$0x1]  ;;  %v1233_v55 = vld [vmem:[#allocation2 + $0x4b] sm:$0x1] }
 0x11b   :  { %620 = vperm.xlu1 %2960, %v2462_v35   ;;  %v1114_v38 = vrot.slane %v1061_v31, 7  ;;  %v1121_v58 = vrot.slane %v1063_v59, 7  ;;  %v1273_v16 = vrot.slane %v1233_v55, 7  ;;  %v1235_v11 = vld [vmem:[#allocation2 + $0x4c] sm:$0x1]  ;;  %v194_v59 = vmul.f32 %v3448_v14, %v3641_v57 }
 0x11c   :  { %v3648_v2 = vpop.permute.xlu1 %99  ;;  %1102 = vrot.lane.b32.xlu0 %v1101_v22, %s3004_s19  ;;  %v1280_v3 = vrot.slane %v1235_v11, 7  ;;  %v1377_v12 = vld [vmem:[#allocation2 + $0x4d] sm:$0x1] }
 0x11d   :  { %v1417_v35 = vrot.slane %v1377_v12, 7 }
 0x11e   :  { %v1060_v20 = vld [vmem:[#allocation2 + $0x11] sm:$0x1]  ;;  %v1062_v49 = vld [vmem:[#allocation2 + $0x12] sm:$0x1]  ;;  %v1232_v47 = vld [vmem:[#allocation2 + $0x13] sm:$0x1] }
 0x11f   :  { %384 = vperm.xlu1 %2960, %v2440_v25   ;;  %v3656_v0 = vsel %vm1067_vm1, %v1114_v38, %v1060_v20  ;;  %v3691_v50 = vsel %vm1067_vm1, %v1121_v58, %v1062_v49  ;;  %v1234_v60 = vld [vmem:[#allocation2 + $0x14] sm:$0x1]  ;;  %v1376_v10 = vld [vmem:[#allocation2 + $0x15] sm:$0x1]  ;;  %v1053_v58 = vld [vmem:[#allocation2 + $0x9] sm:$0x1] }
 0x120   :  { %v3658_v33 = vpop.permute.xlu1 %251  ;;  %1116 = vrot.lane.b32.xlu0 %v3656_v0, %s3005_s22  ;;  %v1093_v49 = vrot.slane %v1054_v62, 7  ;;  %v1058_v27 = vld [vmem:[#allocation2 + $0x10] sm:$0x1]  ;;  %v127_v62 = vmul.f32 %v3453_v15, %v3648_v2 }
 0x121   :  { %v1040_v2 = vld [vmem:[%s4349_s3 + $0x30] sm:$0xff] }
 0x122   :  { %v1094_v57 = vsel %vm1067_vm1, %v1093_v49, %v1053_v58 }
 0x123   :  { %585 = vperm.xlu1 %2960, %v2455_v56   ;;  %v1046_v56 = vld [vmem:[#allocation2 + $0x1] sm:$0x1] }
 0x124   :  { %v3665_v53 = vpop.permute.xlu1 %404  ;;  %1241 = vrot.lane.b32.xlu0 %v1240_v19, %s3006_s23  ;;  %v1073_v24 = vsel %vm1067_vm1, %v1072_v23, %v1046_v56 }
 0x127   :  { %2961 = vset.pattern.permute.xlu1 %v4367_v54 }
 0x128   :  { %480 = vperm.xlu1 %2961, %v2440_v25   ;;  %1251 = vrot.lane.b32.xlu0 %v1101_v22, %s3003_s16  ;;  %v3718_v22 = vsel %vm1067_vm1, %v1417_v35, %v1376_v10  ;;  %v2486_v25 = vld [vmem:[%s4346_s0 + $0x31] sm:$0x7f]  ;;  %v1037_v35 = vld [vmem:[%s4349_s3 + $0x18] sm:$0xff] }
 0x129   :  { %v3671_v42 = vpop.permute.xlu1 %148 }
 0x12c   :  { %2962 = vset.pattern.permute.xlu1 %v4368_v34  ;;  %1258 = vrot.lane.b32.xlu0 %v1257_v51, %s3007_s26  ;;  %v119_v51 = vmul.f32 %v3453_v15, %v60_v44  ;;  %v436_v44 = vmul.f32 %v3474_v46, %v3665_v53 }
 0x12d   :  { %625 = vperm.xlu1 %2962, %v2463_v36   ;;  %v201_v36 = vmul.f32 %v3448_v14, %v3635_v9  ;;  %v311_v9 = vmul.f32 %v3461_v40, %v3658_v33  ;;  %v1034_v33 = vld [vmem:[%s4349_s3] sm:$0xff] }
 0x12e   :  { %v3679_v39 = vpop.permute.xlu1 %291 }
 0x12f   :  { %v215_v21 = vadd.f32 %v201_v36, %v126_v29  ;;  %v319_v58 = vmul.f32 %v3461_v40, %v3679_v39  ;;  %v1041_v39 = vld [vmem:[%s4349_s3 + $0x38] sm:$0xff] }
 0x130   :  { %1265 = vrot.lane.b32.xlu0 %v3682_v17, %s3004_s19 }
 0x131   :  { %2963 = vset.pattern.permute.xlu1 %v4367_v54  ;;  %v287_v54 = vpop.permute.xlu0 %286 }
 0x132   :  { %828 = vperm.xlu1 %2963, %v3410_v52   ;;  %v3700_v52 = vsel %vm1067_vm1, %v1273_v16, %v1232_v47  ;;  %v318_v30 = vmul.f32 %v3461_v40, %v287_v54  ;;  %v1059_v47 = vld [vmem:[#allocation2 + $0x48] sm:$0x1] }
 0x133   :  { %v3688_v5 = vpop.permute.xlu1 %496  ;;  %v1035_v54 = vld [vmem:[%s4349_s3 + $0x8] sm:$0xff]  ;;  %v1107_v37 = vrot.slane %v1059_v47, 7 }
 0x134   :  { %1268 = vrot.lane.b32.xlu0 %v3691_v50, %s3008_s27  ;;  %v332_v53 = vadd.f32 %v318_v30, %v215_v21  ;;  %v3767_v12 = vpack.c.bf16 %v1035_v54, %v1034_v33 }
 0x135   :  { %v65_v8 = vpop.permute.xlu0 %64 }
 0x136   :  { %2964 = vset.pattern.permute.xlu1 %v4368_v34  ;;  %v120_v10 = vmul.f32 %v3453_v15, %v65_v8  ;;  %v450_v36 = vadd.f32 %v436_v44, %v332_v53 }
 0x137   :  { %743 = vperm.xlu1 %2964, %v3177_v26   ;;  %v3710_v26 = vsel %vm1067_vm1, %v1280_v3, %v1234_v60  ;;  %v208_v3 = vadd.f32 %v194_v59, %v119_v51  ;;  %v3011_v60 = vmov 0.0|0.0   ;;  %v3801_v59 = vsel %vm1067_vm1, %v1107_v37, %v1058_v27 }
 0x138   :  { %v3697_v32 = vpop.permute.xlu1 %409  ;;  %1275 = vrot.lane.b32.xlu0 %v3700_v52, %s3005_s22  ;;  %2798 = vmatprep.subr.bf16.mxu0 %v3011_v60 }
 0x139   :  { %v370_v38 = vpop.permute.xlu0 %369  ;;  %2810 = vmatprep.subr.bf16.mxu1 %v3011_v60  ;;  %v325_v23 = vadd.f32 %v311_v9, %v208_v3  ;;  %2800 = vmatpush3.bf16.msra.mxu0 %v3767_v12 }
 0x13a   :  { %v429_v56 = vmul.f32 %v3474_v46, %v370_v38  ;;  %2812 = vmatpush3.bf16.msra.mxu1 %v3767_v12  ;;  %2801 = vmatprep.subr.bf16.mxu0 %v3011_v60  ;;  %v1039_v38 = vld [vmem:[%s4349_s3 + $0x28] sm:$0xff] }
 0x13b   :  { %944 = vperm.xlu1 %2964, %v2493_v7   ;;  %v1036_v7 = vld [vmem:[%s4349_s3 + $0x10] sm:$0xff]  ;;  %2813 = vmatprep.subr.bf16.mxu1 %v3011_v60 }
 0x13c   :  { %v3707_v34 = vpop.permute.xlu1 %610  ;;  %1282 = vrot.lane.b32.xlu0 %v3710_v26, %s3009_s30  ;;  %v3780_v29 = vpack.c.bf16 %v1037_v35, %v1036_v7  ;;  %v1226_v7 = vld [vmem:[#allocation2 + $0x4] sm:$0x1] }
 0x13d   :  { %v3732_v43 = vpop.permute.xlu0 %256  ;;  %v642_v8 = vmul.f32 %v3508_v18, %v3707_v34  ;;  %v518_v34 = vmul.f32 %v3492_v13, %v3303_v4 }
 0x13e   :  { %2803 = vmatpush3.bf16.msra.mxu0 %v3780_v29  ;;  %2815 = vmatpush3.bf16.msra.mxu1 %v3780_v29 }
 0x13f   :  { %708 = vperm.xlu1 %2964, %v3187_v28   ;;  %v2494_v28 = vld [vmem:[%s4346_s0 + $0xb9] sm:$0x7f]  ;;  %s3010_s0 = smov 16   ;;  %2804 = vmatprep.subr.bf16.mxu0 %v3011_v60 }
 0x140   :  { %v3715_v31 = vpop.permute.xlu1 %374  ;;  %1419 = vrot.lane.b32.xlu0 %v3718_v22, %s3005_s22  ;;  %2816 = vmatprep.subr.bf16.mxu1 %v3011_v60 }
 0x141   :  { %v729_v11 = vpop.permute.xlu0 %728  ;;  %v430_v15 = vmul.f32 %v3474_v46, %v3715_v31 }
 0x143   :  { %909 = vperm.xlu1 %2964, %v2486_v25   ;;  %v195_v25 = vmul.f32 %v3448_v14, %v3671_v42 }
 0x144   :  { %v3725_v20 = vpop.permute.xlu1 %575  ;;  %1527 = vrot.lane.b32.xlu0 %v3656_v0, %s3006_s23  ;;  %v1048_v0 = vld [vmem:[#allocation2 + $0x2] sm:$0x1] }
 0x145   :  { %v3750_v16 = vsel %vm1067_vm1, %v1079_v61, %v1048_v0  ;;  %v209_v0 = vadd.f32 %v195_v25, %v120_v10  ;;  %v694_v51 = vpop.permute.xlu0 %693  ;;  %v443_v61 = vadd.f32 %v429_v56, %v325_v23  ;;  %v635_v31 = vmul.f32 %v3508_v18, %v3725_v20  ;;  %v1369_v56 = vld [vmem:[#allocation2 + $0x3d] sm:$0x1] }
 0x146   :  { %v3013_v10 = vmov 0.0   ;;  %v526_v23 = vmul.f32 %v3492_v13, %v3309_v6  ;;  %v753_v27 = vmul.f32 %v3529_v1, %v694_v51  ;;  %v3861_v6 = vld [vmem:[%s4349_s3 + $0x40] sm:$0xff] }
 0x147   :  { %949 = vperm.xlu1 %2964, %v2494_v28   ;;  %v525_v28 = vmul.f32 %v3492_v13, %v3688_v5  ;;  %v1038_v5 = vld [vmem:[%s4349_s3 + $0x20] sm:$0xff]  ;;  %v532_v54 = vadd.f32 %v518_v34, %v443_v61  ;;  %2620 = vmatprep.mubr.msk.f32.mxu0 %vm3012_vm2, %v3013_v10  ;;  %v1383_v34 = vrot.slane %v1369_v56, 7  ;;  %v1371_v61 = vld [vmem:[#allocation2 + $0x3e] sm:$0x1] }
 0x148   :  { %2641 = vmatprep.mubr.msk.f32.mxu1 %vm3012_vm2, %v3013_v10 }
 0x149   :  { %v3734_v19 = vpop.permute.xlu1 %472  ;;  %v539_v30 = vadd.f32 %v525_v28, %v450_v36  ;;  %v649_v53 = vadd.f32 %v635_v31, %v532_v54  ;;  %v4371_v54 = vld [vmem:[#allocation7_spill] sm:$0xff] }
 0x14a   :  { %v519_v47 = vmul.f32 %v3492_v13, %v3734_v19 }
 0x14b   :  { %1074 = vrot.lane.b32.xlu1 %v1073_v24, %s3006_s23  ;;  %v202_v24 = vmul.f32 %v3448_v14, %v3296_v63  ;;  %v3806_v63 = vpack.c.bf16 %v1039_v38, %v1038_v5  ;;  %v312_v14 = vmul.f32 %v3461_v40, %v3732_v43  ;;  %v656_v4 = vadd.f32 %v642_v8, %v539_v30  ;;  %v1368_v38 = vld [vmem:[#allocation2 + $0x5] sm:$0x1] }
 0x14c   :  { %v760_v40 = vmul.f32 %v3529_v1, %v729_v11  ;;  %v437_v43 = vmul.f32 %v3474_v46, %v3697_v32  ;;  %v3832_v11 = vpack.c.bf16 %v1041_v39, %v1040_v2  ;;  %v581_v46 = vpop.permute.xlu0 %580  ;;  %v767_v13 = vadd.f32 %v753_v27, %v649_v53 }
 0x14d   :  { %v216_v49 = vadd.f32 %v202_v24, %v127_v62  ;;  %v326_v9 = vadd.f32 %v312_v14, %v209_v0  ;;  %2806 = vmatpush3.bf16.msra.mxu0 %v3806_v63  ;;  %2818 = vmatpush3.bf16.msra.mxu1 %v3806_v63  ;;  %v636_v8 = vmul.f32 %v3508_v18, %v581_v46 }
 0x14e   :  { %v3747_v55 = vpop.permute.xlu1 %615  ;;  %v774_v20 = vadd.f32 %v760_v40, %v656_v4  ;;  %2807 = vmatprep.subr.bf16.mxu0 %v3011_v60  ;;  %2819 = vmatprep.subr.bf16.mxu1 %v3011_v60  ;;  %v1384_v4 = vsel %vm1067_vm1, %v1383_v34, %v1368_v38  ;;  %v850_v46 = vmul.f32 %v3524_v48, %v4371_v54 }
 0x14f   :  { %1081 = vrot.lane.b32.xlu1 %v3750_v16, %s3010_s0  ;;  %v333_v33 = vadd.f32 %v319_v58, %v216_v49  ;;  %v444_v32 = vadd.f32 %v430_v15, %v326_v9  ;;  %v4369_v58 = vld [vmem:[#allocation6_spill] sm:$0xff]  ;;  %v4370_v15 = vld [vmem:[#allocation8_spill] sm:$0xff] }
 0x150   :  { %v905_v0 = vpop.permute.xlu0 %904  ;;  %v842_v14 = vmul.f32 %v3524_v48, %v4369_v58  ;;  %v843_v2 = vmul.f32 %v3524_v48, %v4370_v15  ;;  %v1378_v15 = vld [vmem:[#allocation2 + $0x16] sm:$0x1] }
 0x151   :  { %v451_v19 = vadd.f32 %v437_v43, %v333_v33  ;;  %v533_v25 = vadd.f32 %v519_v47, %v444_v32  ;;  %2809 = vmatpush3.bf16.msra.mxu0 %v3832_v11  ;;  %2821 = vmatpush3.bf16.msra.mxu1 %v3832_v11  ;;  %v1370_v43 = vld [vmem:[#allocation2 + $0x6] sm:$0x1] }
 0x152   :  { %2618 = vmatprep.subr.mxu0 %v3013_v10  ;;  %2639 = vmatprep.subr.mxu1 %v3013_v10 }
 0x153   :  { %1095 = vrot.lane.b32.xlu1 %v1094_v57, %s3007_s26  ;;  %v821_v42 = vpop.permute.xlu1 %820  ;;  %v1227_v57 = vld [vmem:[#allocation2 + $0x3c] sm:$0x1]  ;;  %v540_v24 = vadd.f32 %v526_v23, %v451_v19  ;;  %v650_v51 = vadd.f32 %v636_v8, %v533_v25  ;;  %v1373_v25 = vld [vmem:[#allocation2 + $0x45] sm:$0x1] }
 0x154   :  { %v849_v44 = vmul.f32 %v3524_v48, %v821_v42  ;;  %v1246_v35 = vrot.slane %v1227_v57, 7  ;;  %v643_v42 = vmul.f32 %v3508_v18, %v3747_v55  ;;  %v1372_v48 = vld [vmem:[#allocation2 + $0xd] sm:$0x1]  ;;  %v1400_v27 = vrot.slane %v1373_v25, 7 }
 0x155   :  { %2619 = vmatpush3.msra.mxu0 %v3861_v6  ;;  %2640 = vmatpush3.msra.mxu1 %v3861_v6 }
 0x156   :  { %v863_v28 = vadd.f32 %v849_v44, %v774_v20  ;;  %v3848_v36 = vsel %vm1067_vm1, %v1246_v35, %v1226_v7  ;;  %v657_v39 = vadd.f32 %v643_v42, %v540_v24  ;;  %2822 = vmatprep.subr.bf16.mxu0 %v3011_v60  ;;  %2834 = vmatprep.subr.bf16.mxu1 %v3011_v60  ;;  %v1375_v42 = vld [vmem:[#allocation2 + $0x46] sm:$0x1] }
 0x157   :  { %1109 = vrot.lane.b32.xlu1 %v3801_v59, %s3008_s27  ;;  %v856_v44 = vadd.f32 %v842_v14, %v767_v13  ;;  %v1374_v13 = vld [vmem:[#allocation2 + $0xe] sm:$0x1] }
 0x158   :  { %v734_v21 = vpop.permute.xlu1 %733 }
 0x159   :  { %v761_v18 = vmul.f32 %v3529_v1, %v734_v21  ;;  %v1390_v21 = vrot.slane %v1371_v61, 7 }
 0x15b   :  { %1123 = vrot.lane.b32.xlu1 %v3691_v50, %s3009_s30  ;;  %v775_v9 = vadd.f32 %v761_v18, %v657_v39  ;;  %v1391_v33 = vsel %vm1067_vm1, %v1390_v21, %v1370_v43 }
 0x15c   :  { %v935_v3 = vpop.permute.xlu1 %934 }
 0x15d   :  { %v966_v37 = vmul.f32 %v3536_v41, %v935_v3  ;;  %v864_v3 = vadd.f32 %v850_v46, %v775_v9 }
 0x15f   :  { %v980_v5 = vadd.f32 %v966_v37, %v863_v28  ;;  %1248 = vrot.lane.b32.xlu1 %v3848_v36, %s3010_s0 }
 0x160   :  { %v699_v62 = vpop.permute.xlu1 %698 }
 0x161   :  { %v1001_v55 = vadd.f32 %v3555_v45, %v980_v5  ;;  %v754_v30 = vmul.f32 %v3529_v1, %v699_v62  ;;  %v960_v1 = vmul.f32 %v3536_v41, %v905_v0  ;;  %v3894_v5 = vpop.permute.xlu0 %69  ;;  %v1379_v0 = vld [vmem:[#allocation2 + $0x4e] sm:$0x1] }
 0x162   :  { %v1424_v14 = vrot.slane %v1379_v0, 7 }
 0x163   :  { %v1015_v49 = vmax.f32 %v1001_v55, 0.0  ;;  %v768_v40 = vadd.f32 %v754_v30, %v650_v51  ;;  %1385 = vrot.lane.b32.xlu1 %v1384_v4, %s3006_s23 }
 0x164   :  { %v900_v31 = vpop.permute.xlu1 %899  ;;  %v3918_v43 = vsel %vm1067_vm1, %v1424_v14, %v1378_v15 }
 0x165   :  { %1030 = vst.msk [vmem:[#allocation2 + $0x50] sm:$0x7f] %vm1019_vm0, %v1015_v49  ;;  %v857_v47 = vadd.f32 %v843_v2, %v768_v40  ;;  %v959_v57 = vmul.f32 %v3536_v41, %v900_v31  ;;  %v3903_v18 = vpop.permute.xlu0 %296 }
 0x167   :  { %v974_v32 = vadd.f32 %v960_v1, %v857_v47  ;;  %v973_v20 = vadd.f32 %v959_v57, %v856_v44  ;;  %1392 = vrot.lane.b32.xlu1 %v1391_v33, %s3010_s0 }
 0x168   :  { %v940_v7 = vpop.permute.xlu1 %939 }
 0x169   :  { %v995_v19 = vadd.f32 %v3555_v45, %v974_v32  ;;  %v994_v53 = vadd.f32 %v3555_v45, %v973_v20  ;;  %v967_v35 = vmul.f32 %v3536_v41, %v940_v7  ;;  %v1401_v41 = vsel %vm1067_vm1, %v1400_v27, %v1372_v48  ;;  %v3912_v49 = vpop.permute.xlu0 %74 }
 0x16b   :  { %v1009_v28 = vmax.f32 %v995_v19, 0.0  ;;  %v1008_v37 = vmax.f32 %v994_v53, 0.0  ;;  %v981_v56 = vadd.f32 %v967_v35, %v864_v3  ;;  %1395 = vrot.lane.b32.xlu1 %v3682_v17, %s3003_s16  ;;  %v1407_v17 = vrot.slane %v1375_v42, 7 }
 0x16c   :  { %v3889_v23 = vpop.permute.xlu1 %104  ;;  %v1514_v24 = vld [vmem:[#allocation2 + $0x50] sm:$0x1]  ;;  %v1516_v51 = vld [vmem:[#allocation2 + $0x51] sm:$0x1]  ;;  %v1518_v2 = vld [vmem:[#allocation2 + $0x52] sm:$0x1] }
 0x16d   :  { %1024 = vst.msk [vmem:[#allocation2 + $0x20] sm:$0x7f] %vm1019_vm0, %v1009_v28  ;;  %1023 = vst.msk [vmem:[#allocation2 + $0x18] sm:$0x7f] %vm1019_vm0, %v1008_v37  ;;  %v1002_v8 = vadd.f32 %v3555_v45, %v981_v56  ;;  %v1408_v34 = vsel %vm1067_vm1, %v1407_v17, %v1374_v13  ;;  %v1535_v45 = vrot.slane %v1514_v24, 7  ;;  %v1542_v4 = vrot.slane %v1516_v51, 7  ;;  %v3928_v33 = vpop.permute.xlu0 %379 }
 0x16e   :  { %v1549_v21 = vrot.slane %v1518_v2, 7  ;;  %v1661_v17 = vld [vmem:[#allocation2 + $0x54] sm:$0x1] }
 0x16f   :  { %v1016_v38 = vmax.f32 %v1002_v8, 0.0  ;;  %1402 = vrot.lane.b32.xlu1 %v1401_v41, %s3007_s26 }
 0x171   :  { %1031 = vst.msk [vmem:[#allocation2 + $0x58] sm:$0x7f] %vm1019_vm0, %v1016_v38  ;;  %v3899_v62 = vpop.permute.xlu1 %180  ;;  %v3940_v35 = vpop.permute.xlu0 %266 }
 0x173   :  { %1409 = vrot.lane.b32.xlu1 %v1408_v34, %s3004_s19 }
 0x174   :  { %v1513_v55 = vld [vmem:[#allocation2 + $0x18] sm:$0x1]  ;;  %v1515_v58 = vld [vmem:[#allocation2 + $0x19] sm:$0x1]  ;;  %v1517_v1 = vld [vmem:[#allocation2 + $0x1a] sm:$0x1] }
 0x175   :  { %v3905_v30 = vpop.permute.xlu1 %152  ;;  %v1536_v61 = vsel %vm1067_vm1, %v1535_v45, %v1513_v55  ;;  %v1543_v39 = vsel %vm1067_vm1, %v1542_v4, %v1515_v58  ;;  %v1550_v9 = vsel %vm1067_vm1, %v1549_v21, %v1517_v1  ;;  %v1520_v54 = vld [vmem:[#allocation2 + $0x20] sm:$0x1]  ;;  %v1522_v19 = vld [vmem:[#allocation2 + $0x21] sm:$0x1]  ;;  %v1524_v37 = vld [vmem:[#allocation2 + $0x22] sm:$0x1]  ;;  %v3953_v8 = vpop.permute.xlu0 %738 }
 0x176   :  { %1537 = vrot.lane.b32.xlu0 %v1536_v61, %s3003_s16  ;;  %v1658_v27 = vld [vmem:[#allocation2 + $0x1b] sm:$0x1]  ;;  %v1662_v41 = vld [vmem:[#allocation2 + $0x23] sm:$0x1]  ;;  %v1660_v34 = vld [vmem:[#allocation2 + $0x1c] sm:$0x1] }
 0x177   :  { %1412 = vrot.lane.b32.xlu1 %v3710_v26, %s3008_s27  ;;  %v1685_v45 = vrot.slane %v1661_v17, 7  ;;  %v1791_v58 = vld [vmem:[#allocation2 + $0x55] sm:$0x1]  ;;  %v1790_v4 = vld [vmem:[#allocation2 + $0x1d] sm:$0x1] }
 0x178   :  { %v1521_v31 = vld [vmem:[#allocation2 + $0x58] sm:$0x1]  ;;  %v1523_v57 = vld [vmem:[#allocation2 + $0x59] sm:$0x1]  ;;  %v1525_v7 = vld [vmem:[#allocation2 + $0x5a] sm:$0x1] }
 0x179   :  { %v1556_v47 = vrot.slane %v1521_v31, 7  ;;  %v1563_v32 = vrot.slane %v1523_v57, 7  ;;  %v1570_v3 = vrot.slane %v1525_v7, 7  ;;  %v1663_v25 = vld [vmem:[#allocation2 + $0x5b] sm:$0x1]  ;;  %v3966_v55 = vpop.permute.xlu0 %703  ;;  %v1686_v51 = vsel %vm1067_vm1, %v1685_v45, %v1660_v34 }
 0x17a   :  { %1544 = vrot.lane.b32.xlu0 %v1543_v39, %s3007_s26  ;;  %v3915_v40 = vpop.permute.xlu1 %109  ;;  %v1695_v48 = vrot.slane %v1663_v25, 7  ;;  %v1665_v61 = vld [vmem:[#allocation2 + $0x5c] sm:$0x1]  ;;  %v1810_v2 = vrot.slane %v1791_v58, 7  ;;  %v1793_v1 = vld [vmem:[#allocation2 + $0x56] sm:$0x1] }
 0x17b   :  { %1426 = vrot.lane.b32.xlu1 %v3918_v43, %s3009_s30  ;;  %v3931_v46 = vsel %vm1067_vm1, %v1556_v47, %v1520_v54  ;;  %v1564_v53 = vsel %vm1067_vm1, %v1563_v32, %v1522_v19  ;;  %v3948_v56 = vsel %vm1067_vm1, %v1570_v3, %v1524_v37  ;;  %v1702_v15 = vrot.slane %v1665_v61, 7  ;;  %v1664_v31 = vld [vmem:[#allocation2 + $0x24] sm:$0x1]  ;;  %v1792_v47 = vld [vmem:[#allocation2 + $0x1e] sm:$0x1] }
 0x17c   :  { %v3958_v13 = vsel %vm1067_vm1, %v1695_v48, %v1662_v41  ;;  %v1817_v57 = vrot.slane %v1793_v1, 7  ;;  %v1795_v19 = vld [vmem:[#allocation2 + $0x5d] sm:$0x1]  ;;  %v1797_v48 = vld [vmem:[#allocation2 + $0x5e] sm:$0x1] }
 0x17d   :  { %v3977_v39 = vpop.permute.xlu0 %590  ;;  %v1827_v3 = vrot.slane %v1795_v19, 7  ;;  %v1834_v41 = vrot.slane %v1797_v48, 7  ;;  %v2967_v34 = vld [vmem:[%s4347_s1] ss:$0 sm:$0xff]  ;;  %v2969_v1 = vld [vmem:[%s4347_s1 + $0x3] ss:$0 sm:$0xff] }
 0x17e   :  { %1551 = vrot.lane.b32.xlu0 %v1550_v9, %s3004_s19  ;;  %v3924_v44 = vpop.permute.xlu1 %261  ;;  %v1818_v54 = vsel %vm1067_vm1, %v1817_v57, %v1792_v47  ;;  %v128_v45 = vmul.f32 %v2967_v34, %v3889_v23  ;;  %v121_v58 = vmul.f32 %v2967_v34, %v3894_v5  ;;  %v2970_v57 = vld [vmem:[%s4347_s1 + $0x4] ss:$0 sm:$0xff] }
 0x17f   :  { %1530 = vrot.lane.b32.xlu1 %v3691_v50, %s3010_s0 }
 0x181   :  { %v3987_v32 = vpop.permute.xlu0 %914 }
 0x182   :  { %1558 = vrot.lane.b32.xlu0 %v3931_v46, %s3008_s27  ;;  %v3935_v20 = vpop.permute.xlu1 %414 }
 0x183   :  { %1667 = vrot.lane.b32.xlu1 %v3700_v52, %s3006_s23  ;;  %v1659_v52 = vld [vmem:[#allocation2 + $0x53] sm:$0x1] }
 0x184   :  { %v1678_v38 = vrot.slane %v1659_v52, 7  ;;  %v1794_v52 = vld [vmem:[#allocation2 + $0x25] sm:$0x1] }
 0x186   :  { %1565 = vrot.lane.b32.xlu0 %v1564_v53, %s3005_s22  ;;  %v1679_v24 = vsel %vm1067_vm1, %v1678_v38, %v1658_v27  ;;  %v3998_v27 = vsel %vm1067_vm1, %v1827_v3, %v1794_v52  ;;  %v431_v52 = vmul.f32 %v2969_v1, %v3928_v33 }
 0x187   :  { %1670 = vrot.lane.b32.xlu1 %v3710_v26, %s3010_s0  ;;  %v3945_v28 = vpop.permute.xlu1 %156 }
 0x18a   :  { %1572 = vrot.lane.b32.xlu0 %v3948_v56, %s3009_s30  ;;  %v3992_v25 = vpop.permute.xlu0 %1088 }
 0x18b   :  { %1673 = vrot.lane.b32.xlu1 %v1550_v9, %s3003_s16  ;;  %v3982_v9 = vsel %vm1067_vm1, %v1702_v15, %v1664_v31 }
 0x18c   :  { %v3955_v42 = vpop.permute.xlu1 %301 }
 0x18e   :  { %1697 = vrot.lane.b32.xlu0 %v3958_v13, %s3005_s22 }
 0x18f   :  { %1680 = vrot.lane.b32.xlu1 %v1679_v24, %s3007_s26  ;;  %v4008_v24 = vpop.permute.xlu0 %1102 }
 0x191   :  { %v3964_v0 = vpop.permute.xlu1 %504 }
 0x192   :  { %1799 = vrot.lane.b32.xlu0 %v3718_v22, %s3006_s23  ;;  %v1811_v22 = vsel %vm1067_vm1, %v1810_v2, %v1790_v4  ;;  %v2968_v4 = vld [vmem:[%s4347_s1 + $0x2] ss:$0 sm:$0xff] }
 0x193   :  { %1687 = vrot.lane.b32.xlu1 %v1686_v51, %s3004_s19  ;;  %v313_v15 = vmul.f32 %v2968_v4, %v3924_v44  ;;  %v320_v23 = vmul.f32 %v2968_v4, %v3903_v18  ;;  %v4030_v31 = vpop.permute.xlu0 %1116  ;;  %v527_v44 = vmul.f32 %v2970_v57, %v3964_v0  ;;  %v122_v18 = vmul.f32 %v2967_v34, %v3912_v49 }
 0x194   :  { %v321_v0 = vmul.f32 %v2968_v4, %v3955_v42  ;;  %v314_v49 = vmul.f32 %v2968_v4, %v3940_v35  ;;  %v2973_v35 = vld [vmem:[%s4347_s1 + $0x7] ss:$0 sm:$0xff] }
 0x196   :  { %1805 = vrot.lane.b32.xlu0 %v1686_v51, %s3003_s16  ;;  %v3973_v14 = vpop.permute.xlu1 %419 }
 0x197   :  { %1690 = vrot.lane.b32.xlu1 %v3948_v56, %s3008_s27  ;;  %v439_v33 = vmul.f32 %v2969_v1, %v3973_v14 }
 0x19a   :  { %1812 = vrot.lane.b32.xlu0 %v1811_v22, %s3007_s26  ;;  %v621_v21 = vpop.permute.xlu1 %620 }
 0x19b   :  { %1704 = vrot.lane.b32.xlu1 %v3982_v9, %s3009_s30 }
 0x19e   :  { %1819 = vrot.lane.b32.xlu0 %v1818_v54, %s3004_s19  ;;  %v385_v7 = vpop.permute.xlu1 %384 }
 0x19f   :  { %1802 = vrot.lane.b32.xlu1 %v3918_v43, %s3010_s0  ;;  %v2966_v43 = vld [vmem:[%s4347_s1 + $0x1] ss:$0 sm:$0xff] }
 0x1a0   :  { %v203_v38 = vmul.f32 %v2966_v43, %v3899_v62  ;;  %v196_v61 = vmul.f32 %v2966_v43, %v3905_v30  ;;  %v438_v30 = vmul.f32 %v2969_v1, %v3935_v20  ;;  %v197_v5 = vmul.f32 %v2966_v43, %v3945_v28  ;;  %v2971_v20 = vld [vmem:[%s4347_s1 + $0x5] ss:$0 sm:$0xff] }
 0x1a1   :  { %v644_v3 = vmul.f32 %v2971_v20, %v621_v21  ;;  %v129_v28 = vmul.f32 %v2967_v34, %v3915_v40 }
 0x1a2   :  { %1822 = vrot.lane.b32.xlu0 %v3982_v9, %s3008_s27  ;;  %v586_v37 = vpop.permute.xlu1 %585  ;;  %v217_v62 = vadd.f32 %v203_v38, %v128_v45  ;;  %v210_v22 = vadd.f32 %v196_v61, %v121_v58 }
 0x1a3   :  { %1937 = vrot.lane.b32.xlu1 %v1564_v53, %s3006_s23  ;;  %v1796_v53 = vld [vmem:[#allocation2 + $0x26] sm:$0x1] }
 0x1a4   :  { %v4015_v51 = vsel %vm1067_vm1, %v1834_v41, %v1796_v53  ;;  %v334_v47 = vadd.f32 %v320_v23, %v217_v62  ;;  %v327_v54 = vadd.f32 %v313_v15, %v210_v22  ;;  %v211_v41 = vadd.f32 %v197_v5, %v122_v18  ;;  %v4372_v53 = vld [vmem:[#allocation9_spill] sm:$0xff]  ;;  %v4045_v62 = vpop.permute.xlu0 %1241  ;;  %v4373_v23 = vld [vmem:[#allocation10_spill] sm:$0xff] }
 0x1a5   :  { %v204_v45 = vmul.f32 %v2966_v43, %v4372_v53  ;;  %v432_v15 = vmul.f32 %v2969_v1, %v385_v7  ;;  %v520_v21 = vmul.f32 %v2970_v57, %v4373_v23  ;;  %v637_v22 = vmul.f32 %v2971_v20, %v586_v37  ;;  %v2972_v43 = vld [vmem:[%s4347_s1 + $0x6] ss:$0 sm:$0xff] }
 0x1a6   :  { %1829 = vrot.lane.b32.xlu0 %v3998_v27, %s3005_s22  ;;  %v452_v19 = vadd.f32 %v438_v30, %v334_v47  ;;  %v445_v61 = vadd.f32 %v431_v52, %v327_v54  ;;  %v762_v34 = vmul.f32 %v2972_v43, %v3953_v8  ;;  %v328_v42 = vadd.f32 %v314_v49, %v211_v41  ;;  %v2974_v8 = vld [vmem:[%s4347_s1 + $0x8] ss:$0 sm:$0xff]  ;;  %v4374_v52 = vld [vmem:[#allocation11_spill] sm:$0xff] }
 0x1a7   :  { %1940 = vrot.lane.b32.xlu1 %v3948_v56, %s3010_s0  ;;  %v481_v17 = vpop.permute.xlu1 %480  ;;  %v218_v30 = vadd.f32 %v204_v45, %v129_v28  ;;  %v528_v28 = vmul.f32 %v2970_v57, %v4374_v52  ;;  %v638_v41 = vmul.f32 %v2971_v20, %v3977_v39  ;;  %v1045_v52 = vld [vmem:[#allocation2 + $0x38] sm:$0x1] }
 0x1a8   :  { %v541_v38 = vadd.f32 %v527_v44, %v452_v19  ;;  %v521_v47 = vmul.f32 %v2970_v57, %v481_v17  ;;  %v534_v5 = vadd.f32 %v520_v21, %v445_v61  ;;  %v446_v44 = vadd.f32 %v432_v15, %v328_v42  ;;  %v4057_v37 = vpop.permute.xlu0 %1251 }
 0x1a9   :  { %v335_v4 = vadd.f32 %v321_v0, %v218_v30  ;;  %v4375_v30 = vld [vmem:[#allocation12_spill] sm:$0xff] }
 0x1aa   :  { %1836 = vrot.lane.b32.xlu0 %v4015_v51, %s3009_s30  ;;  %v658_v58 = vadd.f32 %v644_v3, %v541_v38  ;;  %v651_v1 = vadd.f32 %v637_v22, %v534_v5  ;;  %v535_v19 = vadd.f32 %v521_v47, %v446_v44  ;;  %v4377_v5 = vld [vmem:[#allocation13_spill] sm:$0xff] }
 0x1ab   :  { %v453_v14 = vadd.f32 %v439_v33, %v335_v4  ;;  %v844_v33 = vmul.f32 %v2973_v35, %v4375_v30 }
 0x1ac   :  { %v626_v2 = vpop.permute.xlu1 %625  ;;  %v776_v54 = vadd.f32 %v762_v34, %v658_v58  ;;  %v2975_v58 = vld [vmem:[%s4348_s2] ss:$0 sm:$0xff]  ;;  %v652_v23 = vadd.f32 %v638_v41, %v535_v19  ;;  %v4069_v57 = vpop.permute.xlu0 %1258  ;;  %v962_v34 = vmul.f32 %v2974_v8, %v3987_v32 }
 0x1ad   :  { %v645_v38 = vmul.f32 %v2971_v20, %v626_v2  ;;  %v542_v61 = vadd.f32 %v528_v28, %v453_v14  ;;  %v1044_v41 = vld [vmem:[#allocation2] sm:$0x1] }
 0x1af   :  { %v659_v39 = vadd.f32 %v645_v38, %v542_v61 }
 0x1b0   :  { %v4075_v14 = vpop.permute.xlu0 %1265 }
 0x1b1   :  { %v829_v48 = vpop.permute.xlu1 %828 }
 0x1b2   :  { %v851_v7 = vmul.f32 %v2973_v35, %v829_v48  ;;  %v755_v48 = vmul.f32 %v2972_v43, %v3966_v55  ;;  %v4376_v55 = vld [vmem:[#allocation14_spill] sm:$0xff] }
 0x1b3   :  { %v845_v22 = vmul.f32 %v2973_v35, %v4376_v55 }
 0x1b4   :  { %v865_v3 = vadd.f32 %v851_v7, %v776_v54  ;;  %v769_v45 = vadd.f32 %v755_v48, %v651_v1 }
 0x1b6   :  { %v744_v40 = vpop.permute.xlu1 %743  ;;  %v858_v7 = vadd.f32 %v844_v33, %v769_v45  ;;  %v4079_v45 = vpop.permute.xlu0 %1268 }
 0x1b7   :  { %v763_v49 = vmul.f32 %v2972_v43, %v744_v40 }
 0x1b9   :  { %v777_v40 = vadd.f32 %v763_v49, %v659_v39 }
 0x1ba   :  { %v945_v18 = vpop.permute.xlu1 %944 }
 0x1bb   :  { %v968_v17 = vmul.f32 %v2974_v8, %v945_v18 }
 0x1bd   :  { %v982_v53 = vadd.f32 %v968_v17, %v865_v3 }
 0x1be   :  { %v709_v0 = vpop.permute.xlu1 %708 }
 0x1bf   :  { %v1003_v15 = vadd.f32 %v2975_v58, %v982_v53  ;;  %v756_v21 = vmul.f32 %v2972_v43, %v709_v0  ;;  %v852_v43 = vmul.f32 %v2973_v35, %v4377_v5  ;;  %v1066_v53 = vrot.slane %v1045_v52, 7 }
 0x1c1   :  { %v1017_v2 = vmax.f32 %v1003_v15, 0.0  ;;  %v770_v20 = vadd.f32 %v756_v21, %v652_v23  ;;  %v866_v3 = vadd.f32 %v852_v43, %v777_v40  ;;  %v1068_v0 = vsel %vm1067_vm1, %v1066_v53, %v1044_v41 }
 0x1c2   :  { %v910_v42 = vpop.permute.xlu1 %909 }
 0x1c3   :  { %1032 = vst.msk [vmem:[#allocation2 + $0x60] sm:$0x7f] %vm1019_vm0, %v1017_v2  ;;  %v859_v47 = vadd.f32 %v845_v22, %v770_v20  ;;  %v961_v4 = vmul.f32 %v2974_v8, %v910_v42 }
 0x1c5   :  { %v976_v44 = vadd.f32 %v962_v34, %v859_v47  ;;  %v975_v54 = vadd.f32 %v961_v4, %v858_v7 }
 0x1c6   :  { %v950_v1 = vpop.permute.xlu1 %949 }
 0x1c7   :  { %v997_v18 = vadd.f32 %v2975_v58, %v976_v44  ;;  %v996_v19 = vadd.f32 %v2975_v58, %v975_v54  ;;  %v969_v17 = vmul.f32 %v2974_v8, %v950_v1 }
 0x1c9   :  { %v1011_v32 = vmax.f32 %v997_v18, 0.0  ;;  %v1010_v28 = vmax.f32 %v996_v19, 0.0  ;;  %v983_v48 = vadd.f32 %v969_v17, %v866_v3 }
 0x1ca   :  { %v1075_v38 = vpop.permute.xlu1 %1074  ;;  %v1924_v15 = vld [vmem:[#allocation2 + $0x60] sm:$0x1]  ;;  %v1926_v22 = vld [vmem:[#allocation2 + $0x61] sm:$0x1] }
 0x1cb   :  { %1026 = vst.msk [vmem:[#allocation2 + $0x30] sm:$0x7f] %vm1019_vm0, %v1011_v32  ;;  %1025 = vst.msk [vmem:[#allocation2 + $0x28] sm:$0x7f] %vm1019_vm0, %v1010_v28  ;;  %v1004_v35 = vadd.f32 %v2975_v58, %v983_v48  ;;  %v1127_v8 = vsel %vm1126_vm4, %v1068_v0, %v1075_v38  ;;  %v1945_v21 = vrot.slane %v1924_v15, 7  ;;  %v4085_v58 = vpop.permute.xlu0 %1275  ;;  %v1952_v34 = vrot.slane %v1926_v22, 7 }
 0x1cd   :  { %v1018_v61 = vmax.f32 %v1004_v35, 0.0 }
 0x1ce   :  { %v1082_v49 = vpop.permute.xlu1 %1081 }
 0x1cf   :  { %1033 = vst.msk [vmem:[#allocation2 + $0x68] sm:$0x7f] %vm1019_vm0, %v1018_v61  ;;  %v1129_v23 = vsel %vm1128_vm3, %v1127_v8, %v1082_v49  ;;  %v1283_v43 = vpop.permute.xlu0 %1282 }
 0x1d0   :  { %v1131_v30 = vsel %vm1130_vm5, %v1129_v23, %v3992_v25  ;;  %v1928_v25 = vld [vmem:[#allocation2 + $0x62] sm:$0x1] }
 0x1d1   :  { %v1959_v19 = vrot.slane %v1928_v25, 7 }
 0x1d2   :  { %v1096_v33 = vpop.permute.xlu1 %1095  ;;  %v1923_v55 = vld [vmem:[#allocation2 + $0x28] sm:$0x1]  ;;  %v1925_v20 = vld [vmem:[#allocation2 + $0x29] sm:$0x1]  ;;  %v1932_v44 = vld [vmem:[#allocation2 + $0x31] sm:$0x1] }
 0x1d3   :  { %v1133_v39 = vsel %vm1132_vm6, %v1131_v30, %v1096_v33  ;;  %v1946_v2 = vsel %vm1067_vm1, %v1945_v21, %v1923_v55  ;;  %v1953_v4 = vsel %vm1067_vm1, %v1952_v34, %v1925_v20  ;;  %v1927_v54 = vld [vmem:[#allocation2 + $0x2a] sm:$0x1]  ;;  %v4111_v48 = vpop.permute.xlu0 %1419  ;;  %v1930_v38 = vld [vmem:[#allocation2 + $0x30] sm:$0x1]  ;;  %v1934_v49 = vld [vmem:[#allocation2 + $0x32] sm:$0x1] }
 0x1d4   :  { %1947 = vrot.lane.b32.xlu1 %v1946_v2, %s3003_s16  ;;  %v1135_v42 = vsel %vm1134_vm7, %v1133_v39, %v4008_v24  ;;  %v1960_v52 = vsel %vm1067_vm1, %v1959_v19, %v1927_v54  ;;  %v2068_v15 = vld [vmem:[#allocation2 + $0x2b] sm:$0x1]  ;;  %v2201_v54 = vld [vmem:[#allocation2 + $0x65] sm:$0x1] }
 0x1d6   :  { %v1110_v40 = vpop.permute.xlu1 %1109  ;;  %v1933_v47 = vld [vmem:[#allocation2 + $0x69] sm:$0x1]  ;;  %v1931_v1 = vld [vmem:[#allocation2 + $0x68] sm:$0x1]  ;;  %v1935_v28 = vld [vmem:[#allocation2 + $0x6a] sm:$0x1] }
 0x1d7   :  { %v1137_v7 = vsel %vm1136_vm8, %v1135_v42, %v1110_v40  ;;  %v1973_v5 = vrot.slane %v1933_v47, 7  ;;  %v1966_v32 = vrot.slane %v1931_v1, 7  ;;  %v1980_v61 = vrot.slane %v1935_v28, 7  ;;  %v4131_v30 = vpop.permute.xlu0 %1527  ;;  %v2073_v34 = vld [vmem:[#allocation2 + $0x6b] sm:$0x1] }
 0x1d8   :  { %1954 = vrot.lane.b32.xlu1 %v1953_v4, %s3007_s26  ;;  %v1139_v24 = vsel %vm1138_vm9, %v1137_v7, %v4030_v31  ;;  %v1285_v31 = vsel %vm1126_vm4, %v3750_v16, %v4045_v62  ;;  %v2069_v16 = vld [vmem:[#allocation2 + $0x63] sm:$0x1]  ;;  %v2105_v40 = vrot.slane %v2073_v34, 7  ;;  %v2075_v25 = vld [vmem:[#allocation2 + $0x6c] sm:$0x1] }
 0x1d9   :  { %v1974_v18 = vsel %vm1067_vm1, %v1973_v5, %v1932_v44  ;;  %v1967_v53 = vsel %vm1067_vm1, %v1966_v32, %v1930_v38  ;;  %v2088_v23 = vrot.slane %v2069_v16, 7  ;;  %v2072_v4 = vld [vmem:[#allocation2 + $0x33] sm:$0x1]  ;;  %v2112_v5 = vrot.slane %v2075_v25, 7  ;;  %v2205_v1 = vld [vmem:[#allocation2 + $0x6d] sm:$0x1] }
 0x1da   :  { %1975 = vrot.lane.b32.xlu0 %v1974_v18, %s3005_s22  ;;  %v1124_v3 = vpop.permute.xlu1 %1123  ;;  %v2237_v32 = vrot.slane %v2205_v1, 7 }
 0x1db   :  { %v1141_v17 = vsel %vm1140_vm10, %v1139_v24, %v1124_v3  ;;  %v2089_v33 = vsel %vm1067_vm1, %v2088_v23, %v2068_v15  ;;  %v2074_v24 = vld [vmem:[#allocation2 + $0x34] sm:$0x1]  ;;  %v2200_v3 = vld [vmem:[#allocation2 + $0x2d] sm:$0x1]  ;;  %v2207_v23 = vld [vmem:[#allocation2 + $0x6e] sm:$0x1] }
 0x1dc   :  { %1961 = vrot.lane.b32.xlu1 %v1960_v52, %s3004_s19  ;;  %2621 = vmatmul.mubr.msk.f32.vlgmr.msra.gmra.mrb[0].mxu0 %vm1148_vm11, %v1141_v17  ;;  %v2113_v17 = vsel %vm1067_vm1, %v2112_v5, %v2074_v24 }
 0x1dd   :  { %2824 = vmatpush3.bf16.msra.mxu0 %v3767_v12  ;;  %2662 = vmatprep.mubr.msk.f32.mxu0 %vm3012_vm2, %v3013_v10 }
 0x1de   :  { %2077 = vrot.lane.b32.xlu0 %v3958_v13, %s3006_s23  ;;  %v1249_v41 = vpop.permute.xlu1 %1248  ;;  %2825 = vmatprep.subr.bf16.mxu0 %v3011_v60 }
 0x1df   :  { %v1286_v35 = vsel %vm1128_vm3, %v1285_v31, %v1249_v41  ;;  %v2203_v41 = vld [vmem:[#allocation2 + $0x66] sm:$0x1] }
 0x1e0   :  { %v1287_v0 = vsel %vm1130_vm5, %v1286_v35, %v4057_v37  ;;  %1968 = vrot.lane.b32.xlu1 %v1967_v53, %s3008_s27  ;;  %v1981_v37 = vsel %vm1067_vm1, %v1980_v61, %v1934_v49  ;;  %v2204_v61 = vld [vmem:[#allocation2 + $0x35] sm:$0x1] }
 0x1e1   :  { %v1288_v62 = vsel %vm1132_vm6, %v1287_v0, %v4069_v57  ;;  %2827 = vmatpush3.bf16.msra.mxu0 %v3780_v29  ;;  %v2202_v0 = vld [vmem:[#allocation2 + $0x2e] sm:$0x1]  ;;  %v2238_v16 = vsel %vm1067_vm1, %v2237_v32, %v2204_v61  ;;  %v2976_v61 = vld [vmem:[%s4349_s3 + $0x40] sm:$0xff] }
 0x1e2   :  { %v1289_v13 = vsel %vm1134_vm7, %v1288_v62, %v4075_v14  ;;  %2083 = vrot.lane.b32.xlu0 %v1960_v52, %s3003_s16  ;;  %v1386_v8 = vpop.permute.xlu1 %1385  ;;  %2828 = vmatprep.subr.bf16.mxu0 %v3011_v60  ;;  %v2071_v14 = vld [vmem:[#allocation2 + $0x64] sm:$0x1]  ;;  %v2220_v52 = vrot.slane %v2201_v54, 7  ;;  %v2227_v62 = vrot.slane %v2203_v41, 7 }
 0x1e3   :  { %v1290_v21 = vsel %vm1136_vm8, %v1289_v13, %v4079_v45  ;;  %v2070_v45 = vld [vmem:[#allocation2 + $0x2c] sm:$0x1]  ;;  %v2095_v39 = vrot.slane %v2071_v14, 7  ;;  %v2244_v14 = vrot.slane %v2207_v23, 7 }
 0x1e4   :  { %1982 = vrot.lane.b32.xlu1 %v1981_v37, %s3009_s30  ;;  %v1291_v57 = vsel %vm1138_vm9, %v1290_v21, %v4085_v58  ;;  %v2221_v35 = vsel %vm1067_vm1, %v2220_v52, %v2200_v3  ;;  %v2228_v15 = vsel %vm1067_vm1, %v2227_v62, %v2202_v0 }
 0x1e5   :  { %v1292_v55 = vsel %vm1140_vm10, %v1291_v57, %v1283_v43  ;;  %2830 = vmatpush3.bf16.msra.mxu0 %v3806_v63  ;;  %v2096_v58 = vsel %vm1067_vm1, %v2095_v39, %v2070_v45  ;;  %v1429_v43 = vsel %vm1126_vm4, %v3848_v36, %v1386_v8 }
 0x1e6   :  { %2090 = vrot.lane.b32.xlu0 %v2089_v33, %s3007_s26  ;;  %2642 = vmatmul.mubr.msk.f32.vlgmr.msra.gmra.mrb[0].mxu1 %vm1148_vm11, %v1292_v55  ;;  %v1393_v22 = vpop.permute.xlu1 %1392 }
 0x1e7   :  { %2836 = vmatpush3.bf16.msra.mxu1 %v3767_v12  ;;  %2831 = vmatprep.subr.bf16.mxu0 %v3011_v60  ;;  %v1430_v18 = vsel %vm1128_vm3, %v1429_v43, %v1393_v22 }
 0x1e8   :  { %v4143_v2 = vpop.permute.xlu0 %1537  ;;  %2080 = vrot.lane.b32.xlu1 %v3982_v9, %s3010_s0  ;;  %2837 = vmatprep.subr.bf16.mxu1 %v3011_v60 }
 0x1e9   :  { %2833 = vmatpush3.bf16.msra.mxu0 %v3832_v11  ;;  %2683 = vmatprep.mubr.msk.f32.mxu1 %vm3012_vm2, %v3013_v10 }
 0x1ea   :  { %2097 = vrot.lane.b32.xlu0 %v2096_v58, %s3004_s19  ;;  %v1396_v20 = vpop.permute.xlu1 %1395  ;;  %2660 = vmatprep.subr.mxu0 %v3013_v10 }
 0x1eb   :  { %2839 = vmatpush3.bf16.msra.mxu1 %v3780_v29 }
 0x1ec   :  { %v4155_v42 = vpop.permute.xlu0 %1544  ;;  %2209 = vrot.lane.b32.xlu1 %v3998_v27, %s3006_s23  ;;  %2840 = vmatprep.subr.bf16.mxu1 %v3011_v60  ;;  %v2106_v27 = vsel %vm1067_vm1, %v2105_v40, %v2072_v4 }
 0x1ed   :  { %2661 = vmatpush3.msra.mxu0 %v3861_v6 }
 0x1ee   :  { %2100 = vrot.lane.b32.xlu0 %v1981_v37, %s3008_s27  ;;  %v1403_v47 = vpop.permute.xlu1 %1402  ;;  %2846 = vmatprep.subr.bf16.mxu0 %v3011_v60 }
 0x1ef   :  { %2842 = vmatpush3.bf16.msra.mxu1 %v3806_v63 }
 0x1f0   :  { %v1552_v7 = vpop.permute.xlu0 %1551  ;;  %2212 = vrot.lane.b32.xlu1 %v4015_v51, %s3010_s0  ;;  %2843 = vmatprep.subr.bf16.mxu1 %v3011_v60  ;;  %v1431_v51 = vsel %vm1130_vm5, %v1430_v18, %v1396_v20 }
 0x1f1   :  { %v1432_v36 = vsel %vm1132_vm6, %v1431_v51, %v1403_v47 }
 0x1f2   :  { %2107 = vrot.lane.b32.xlu0 %v2106_v27, %s3005_s22  ;;  %v1410_v44 = vpop.permute.xlu1 %1409 }
 0x1f3   :  { %2845 = vmatpush3.bf16.msra.mxu1 %v3832_v11  ;;  %v1433_v28 = vsel %vm1134_vm7, %v1432_v36, %v1410_v44 }
 0x1f4   :  { %v1559_v19 = vpop.permute.xlu0 %1558  ;;  %2215 = vrot.lane.b32.xlu1 %v2096_v58, %s3003_s16  ;;  %2681 = vmatprep.subr.mxu1 %v3013_v10 }
 0x1f6   :  { %2114 = vrot.lane.b32.xlu0 %v2113_v17, %s3009_s30  ;;  %v1413_v31 = vpop.permute.xlu1 %1412 }
 0x1f7   :  { %v1434_v38 = vsel %vm1136_vm8, %v1433_v28, %v1413_v31  ;;  %2682 = vmatpush3.msra.mxu1 %v3861_v6 }
 0x1f8   :  { %v1566_v53 = vpop.permute.xlu0 %1565  ;;  %2222 = vrot.lane.b32.xlu1 %v2221_v35, %s3007_s26  ;;  %2858 = vmatprep.subr.bf16.mxu1 %v3011_v60  ;;  %v1435_v13 = vsel %vm1138_vm9, %v1434_v38, %v4111_v48  ;;  %v1575_v48 = vsel %vm1126_vm4, %v3801_v59, %v4131_v30  ;;  %v2206_v30 = vld [vmem:[#allocation2 + $0x36] sm:$0x1] }
 0x1f9   :  { %v2245_v39 = vsel %vm1067_vm1, %v2244_v14, %v2206_v30 }
 0x1fa   :  { %2239 = vrot.lane.b32.xlu0 %v2238_v16, %s3005_s22  ;;  %v1427_v8 = vpop.permute.xlu1 %1426 }
 0x1fb   :  { %v1436_v49 = vsel %vm1140_vm10, %v1435_v13, %v1427_v8 }
 0x1fc   :  { %v1573_v37 = vpop.permute.xlu0 %1572  ;;  %2229 = vrot.lane.b32.xlu1 %v2228_v15, %s3004_s19  ;;  %2663 = vmatmul.mubr.msk.f32.vlgmr.msra.gmra.mrb[2].mxu0 %vm1148_vm11, %v1436_v49 }
 0x1fd   :  { %2848 = vmatpush3.bf16.msra.mxu0 %v3767_v12  ;;  %2704 = vmatprep.mubr.msk.f32.mxu0 %vm3012_vm2, %v3013_v10 }
 0x1fe   :  { %v1531_v21 = vpop.permute.xlu1 %1530  ;;  %2849 = vmatprep.subr.bf16.mxu0 %v3011_v60 }
 0x1ff   :  { %v1576_v57 = vsel %vm1128_vm3, %v1575_v48, %v1531_v21 }
 0x200   :  { %v1577_v33 = vsel %vm1130_vm5, %v1576_v57, %v4143_v2  ;;  %v1698_v55 = vpop.permute.xlu0 %1697  ;;  %2232 = vrot.lane.b32.xlu1 %v2113_v17, %s3008_s27  ;;  %s3014_s27 = smov [#allocation3]  }
 0x201   :  { %v1578_v22 = vsel %vm1132_vm6, %v1577_v33, %v4155_v42  ;;  %2851 = vmatpush3.bf16.msra.mxu0 %v3780_v29 }
 0x202   :  { %v1579_v45 = vsel %vm1134_vm7, %v1578_v22, %v1552_v7  ;;  %v1668_v59 = vpop.permute.xlu1 %1667  ;;  %2852 = vmatprep.subr.bf16.mxu0 %v3011_v60 }
 0x203   :  { %v1580_v58 = vsel %vm1136_vm8, %v1579_v45, %v1559_v19  ;;  %v1707_v4 = vsel %vm1126_vm4, %v3691_v50, %v1668_v59 }
 0x204   :  { %v1800_v20 = vpop.permute.xlu0 %1799  ;;  %2246 = vrot.lane.b32.xlu1 %v2245_v39, %s3009_s30  ;;  %v1581_v2 = vsel %vm1138_vm9, %v1580_v58, %v1566_v53  ;;  %s2423_s30 = sshll.u32 %s3014_s27, 4  ;;  %s2424_s30 = int_to_ptr.vmem [resolvable:$true] %s2423_s30 }
 0x205   :  { %v1582_v34 = vsel %vm1140_vm10, %v1581_v2, %v1573_v37  ;;  %2854 = vmatpush3.bf16.msra.mxu0 %v3806_v63  ;;  %v1839_v36 = vsel %vm1126_vm4, %v3710_v26, %v1800_v20  ;;  %s2977_s0 = scalar_lea.vmem %s2424_s30, 32  ;;  %p2982_p1 = scmp.lt.s32.totalorder %s2424_s30, %s2424_s30 }
 0x206   :  { %2684 = vmatmul.mubr.msk.f32.vlgmr.msra.gmra.mrb[2].mxu1 %vm1148_vm11, %v1582_v34  ;;  %v1671_v42 = vpop.permute.xlu1 %1670  ;;  %2855 = vmatprep.subr.bf16.mxu0 %v3011_v60  ;;  %p2978_p0 = scmp.ne.s32.totalorder %s2424_s30, %s2977_s0  ;;  %p2983_p2 = scmp.lt.s32.totalorder %s2977_s0, %s2977_s0 }
 0x207   :  { %2860 = vmatpush3.bf16.msra.mxu1 %v3767_v12  ;;  %2725 = vmatprep.mubr.msk.f32.mxu1 %vm3012_vm2, %v3013_v10  ;;  %v1708_v43 = vsel %vm1128_vm3, %v1707_v4, %v1671_v42 }
 0x208   :  { %v1806_v40 = vpop.permute.xlu0 %1805  ;;  %2861 = vmatprep.subr.bf16.mxu1 %v3011_v60  ;;  %p2984_p3 = por %p2983_p2, %p2982_p1 }
 0x209   :  { %2857 = vmatpush3.bf16.msra.mxu0 %v3832_v11 }
 0x20a   :  { %v1674_v47 = vpop.permute.xlu1 %1673  ;;  %2702 = vmatprep.subr.mxu0 %v3013_v10  ;;  %p2985_p4 = pnand %p2984_p3, %p2978_p0 }
 0x20b   :  { %2863 = vmatpush3.bf16.msra.mxu1 %v3780_v29  ;;  %v1709_v44 = vsel %vm1130_vm5, %v1708_v43, %v1674_v47 }
 0x20c   :  { %v1813_v25 = vpop.permute.xlu0 %1812  ;;  %2864 = vmatprep.subr.bf16.mxu1 %v3011_v60 }
 0x20d   :  { %2703 = vmatpush3.msra.mxu0 %v3861_v6 }
 0x20e   :  { %v1681_v7 = vpop.permute.xlu1 %1680  ;;  %2870 = vmatprep.subr.bf16.mxu0 %v3011_v60 }
 0x20f   :  { %2866 = vmatpush3.bf16.msra.mxu1 %v3806_v63  ;;  %v1710_v54 = vsel %vm1132_vm6, %v1709_v44, %v1681_v7 }
 0x210   :  { %2867 = vmatprep.subr.bf16.mxu1 %v3011_v60  ;;  %v1820_v27 = vpop.permute.xlu0 %1819 }
 0x212   :  { %v1688_v5 = vpop.permute.xlu1 %1687 }
 0x213   :  { %2869 = vmatpush3.bf16.msra.mxu1 %v3832_v11  ;;  %v1711_v1 = vsel %vm1134_vm7, %v1710_v54, %v1688_v5 }
 0x214   :  { %2723 = vmatprep.subr.mxu1 %v3013_v10  ;;  %v1823_v50 = vpop.permute.xlu0 %1822 }
 0x216   :  { %v1691_v18 = vpop.permute.xlu1 %1690 }
 0x217   :  { %v1712_v51 = vsel %vm1136_vm8, %v1711_v1, %v1691_v18  ;;  %2724 = vmatpush3.msra.mxu1 %v3861_v6 }
 0x218   :  { %2882 = vmatprep.subr.bf16.mxu1 %v3011_v60  ;;  %v1713_v19 = vsel %vm1138_vm9, %v1712_v51, %v1698_v55  ;;  %v1830_v17 = vpop.permute.xlu0 %1829 }
 0x21a   :  { %v1705_v24 = vpop.permute.xlu1 %1704 }
 0x21b   :  { %v1714_v3 = vsel %vm1140_vm10, %v1713_v19, %v1705_v24  ;;  %v2497_v24 = vld [vmem:[%s4350_s4] ss:$0 sm:$0xff] }
 0x21c   :  { %2705 = vmatmul.mubr.msk.f32.vlgmr.msra.gmra.mrb[4].mxu0 %vm1148_vm11, %v1714_v3  ;;  %v1837_v35 = vpop.permute.xlu0 %1836 }
 0x21d   :  { %2872 = vmatpush3.bf16.msra.mxu0 %v3767_v12  ;;  %2746 = vmatprep.mubr.msk.f32.mxu0 %vm3012_vm2, %v3013_v10 }
 0x21e   :  { %v1803_v52 = vpop.permute.xlu1 %1802  ;;  %2873 = vmatprep.subr.bf16.mxu0 %v3011_v60 }
 0x21f   :  { %v1840_v32 = vsel %vm1128_vm3, %v1839_v36, %v1803_v52 }
 0x220   :  { %v1841_v28 = vsel %vm1130_vm5, %v1840_v32, %v1806_v40 }
 0x221   :  { %v1842_v31 = vsel %vm1132_vm6, %v1841_v28, %v1813_v25  ;;  %2875 = vmatpush3.bf16.msra.mxu0 %v3780_v29 }
 0x222   :  { %v1843_v41 = vsel %vm1134_vm7, %v1842_v31, %v1820_v27  ;;  %2876 = vmatprep.subr.bf16.mxu0 %v3011_v60  ;;  %v1938_v0 = vpop.permute.xlu1 %1937 }
 0x223   :  { %v1844_v38 = vsel %vm1136_vm8, %v1843_v41, %v1823_v50  ;;  %v1985_v8 = vsel %vm1126_vm4, %v3931_v46, %v1938_v0 }
 0x224   :  { %v1845_v26 = vsel %vm1138_vm9, %v1844_v38, %v1830_v17 }
 0x225   :  { %v1846_v53 = vsel %vm1140_vm10, %v1845_v26, %v1837_v35  ;;  %2878 = vmatpush3.bf16.msra.mxu0 %v3806_v63 }
 0x226   :  { %2726 = vmatmul.mubr.msk.f32.vlgmr.msra.gmra.mrb[4].mxu1 %vm1148_vm11, %v1846_v53  ;;  %2879 = vmatprep.subr.bf16.mxu0 %v3011_v60  ;;  %v1941_v16 = vpop.permute.xlu1 %1940  ;;  %v2333_v53 = vld [vmem:[%s4351_s5] sm:$0xff] }
 0x227   :  { %2884 = vmatpush3.bf16.msra.mxu1 %v3767_v12  ;;  %2767 = vmatprep.mubr.msk.f32.mxu1 %vm3012_vm2, %v3013_v10  ;;  %v1986_v15 = vsel %vm1128_vm3, %v1985_v8, %v1941_v16 }
 0x228   :  { %2885 = vmatprep.subr.bf16.mxu1 %v3011_v60 }
 0x229   :  { %2881 = vmatpush3.bf16.msra.mxu0 %v3832_v11 }
 0x22a   :  { %2744 = vmatprep.subr.mxu0 %v3013_v10 }
 0x22b   :  { %2887 = vmatpush3.bf16.msra.mxu1 %v3780_v29 }
 0x22c   :  { %2888 = vmatprep.subr.bf16.mxu1 %v3011_v60 }
 0x22d   :  { %2745 = vmatpush3.msra.mxu0 %v3861_v6 }
 0x22e   :  { %2894 = vmatprep.subr.bf16.mxu0 %v3011_v60 }
 0x22f   :  { %2890 = vmatpush3.bf16.msra.mxu1 %v3806_v63 }
 0x230   :  { %2891 = vmatprep.subr.bf16.mxu1 %v3011_v60 }
 0x233   :  { %2893 = vmatpush3.bf16.msra.mxu1 %v3832_v11 }
 0x234   :  { %2765 = vmatprep.subr.mxu1 %v3013_v10 }
 0x237   :  { %2766 = vmatpush3.msra.mxu1 %v2976_v61 }
 0x238   :  { %2906 = vmatprep.subr.bf16.mxu1 %v3011_v60 }
 0x246   :  { %v1948_v6 = vpop.permute.xlu1 %1947 }
 0x247   :  { %v1987_v37 = vsel %vm1130_vm5, %v1986_v15, %v1948_v6 }
 0x24a   :  { %v1955_v62 = vpop.permute.xlu1 %1954 }
 0x24b   :  { %v1988_v48 = vsel %vm1132_vm6, %v1987_v37, %v1955_v62 }
 0x24c   :  { %v1976_v13 = vpop.permute.xlu0 %1975 }
 0x24e   :  { %v1962_v49 = vpop.permute.xlu1 %1961 }
 0x24f   :  { %v1989_v21 = vsel %vm1134_vm7, %v1988_v48, %v1962_v49 }
 0x250   :  { %v2078_v23 = vpop.permute.xlu0 %2077 }
 0x251   :  { %v2117_v30 = vsel %vm1126_vm4, %v3948_v56, %v2078_v23 }
 0x252   :  { %v1969_v57 = vpop.permute.xlu1 %1968 }
 0x253   :  { %v1990_v14 = vsel %vm1136_vm8, %v1989_v21, %v1969_v57 }
 0x254   :  { %v2084_v33 = vpop.permute.xlu0 %2083  ;;  %v1991_v55 = vsel %vm1138_vm9, %v1990_v14, %v1976_v13 }
 0x256   :  { %v1983_v22 = vpop.permute.xlu1 %1982 }
 0x257   :  { %v1992_v45 = vsel %vm1140_vm10, %v1991_v55, %v1983_v22 }
 0x258   :  { %v2091_v46 = vpop.permute.xlu0 %2090  ;;  %2747 = vmatmul.mubr.msk.f32.vlgmr.msra.gmra.mrb[6].mxu0 %vm1148_vm11, %v1992_v45 }
 0x259   :  { %2896 = vmatpush3.bf16.msra.mxu0 %v3767_v12  ;;  %2788 = vmatprep.mubr.msk.f32.mxu0 %vm3012_vm2, %v3013_v10 }
 0x25a   :  { %v2081_v59 = vpop.permute.xlu1 %2080  ;;  %2897 = vmatprep.subr.bf16.mxu0 %v3011_v60 }
 0x25b   :  { %v2118_v58 = vsel %vm1128_vm3, %v2117_v30, %v2081_v59 }
 0x25c   :  { %v2098_v39 = vpop.permute.xlu0 %2097  ;;  %v2119_v2 = vsel %vm1130_vm5, %v2118_v58, %v2084_v33 }
 0x25d   :  { %2899 = vmatpush3.bf16.msra.mxu0 %v3780_v29  ;;  %v2120_v42 = vsel %vm1132_vm6, %v2119_v2, %v2091_v46 }
 0x25e   :  { %v2210_v20 = vpop.permute.xlu1 %2209  ;;  %2900 = vmatprep.subr.bf16.mxu0 %v3011_v60  ;;  %v2121_v56 = vsel %vm1134_vm7, %v2120_v42, %v2098_v39 }
 0x260   :  { %v2101_v12 = vpop.permute.xlu0 %2100 }
 0x261   :  { %2902 = vmatpush3.bf16.msra.mxu0 %v3806_v63  ;;  %v2122_v29 = vsel %vm1136_vm8, %v2121_v56, %v2101_v12 }
 0x262   :  { %v2213_v34 = vpop.permute.xlu1 %2212  ;;  %2903 = vmatprep.subr.bf16.mxu0 %v3011_v60 }
 0x264   :  { %v2108_v40 = vpop.permute.xlu0 %2107 }
 0x265   :  { %2905 = vmatpush3.bf16.msra.mxu0 %v3832_v11  ;;  %v2123_v25 = vsel %vm1138_vm9, %v2122_v29, %v2108_v40  ;;  %v2249_v11 = vsel %vm1126_vm4, %v3982_v9, %v2210_v20 }
 0x266   :  { %v2216_v47 = vpop.permute.xlu1 %2215  ;;  %2786 = vmatprep.subr.mxu0 %v3013_v10  ;;  %v2250_v27 = vsel %vm1128_vm3, %v2249_v11, %v2213_v34 }
 0x267   :  { %v2251_v5 = vsel %vm1130_vm5, %v2250_v27, %v2216_v47 }
 0x268   :  { %v2115_v7 = vpop.permute.xlu0 %2114 }
 0x269   :  { %v2124_v63 = vsel %vm1140_vm10, %v2123_v25, %v2115_v7  ;;  %2787 = vmatpush3.msra.mxu0 %v2976_v61  ;;  %v2334_v61 = vld [vmem:[%s4351_s5 + $0x8] sm:$0xff]  ;;  %v2507_v7 = vld [vmem:[%s4352_s6] ss:$0 sm:$0xff] }
 0x26a   :  { %2768 = vmatmul.mubr.msk.f32.vlgmr.msra.gmra.mrb[6].mxu1 %vm1148_vm11, %v2124_v63  ;;  %v2223_v60 = vpop.permute.xlu1 %2222  ;;  %v2907_v0 = vpack.c.bf16 %v2334_v61, %v2333_v53 }
 0x26b   :  { %2795 = vmatprep.mubr.msk.f32.mxu1 %vm3012_vm2, %v3013_v10  ;;  %v2252_v43 = vsel %vm1132_vm6, %v2251_v5, %v2223_v60 }
 0x26c   :  { %v2240_v18 = vpop.permute.xlu0 %2239  ;;  %2908 = vmatpush3.bf16.msra.mxu1 %v2907_v0 }
 0x26e   :  { %v2230_v4 = vpop.permute.xlu1 %2229 }
 0x26f   :  { %v2253_v44 = vsel %vm1134_vm7, %v2252_v43, %v2230_v4 }
 0x272   :  { %v2233_v54 = vpop.permute.xlu1 %2232 }
 0x273   :  { %v2254_v1 = vsel %vm1136_vm8, %v2253_v44, %v2233_v54 }
 0x274   :  { %v2255_v51 = vsel %vm1138_vm9, %v2254_v1, %v2240_v18 }
 0x276   :  { %v2247_v50 = vpop.permute.xlu1 %2246 }
 0x277   :  { %v2256_v10 = vsel %vm1140_vm10, %v2255_v51, %v2247_v50 }
 0x278   :  { %2789 = vmatmul.mubr.msk.f32.vlgmr.msra.gmra.mrb[8].mxu0 %vm1148_vm11, %v2256_v10 }
 0x2af   :  { %v1218_v9 = vpop.f32.mrb[0].mxu0 }
 0x2b0   :  { %v2622_v19 = vpop.f32.mrb[1].mxu0  ;;  %v1219_v3 = vadd.f32 %v2497_v24, %v1218_v9 }
 0x2b2   :  { %v1222_v32 = vmax.f32 %v1219_v3, 0.0 }
 0x2b9   :  { %v1362_v36 = vpop.f32.mrb[0].mxu1 }
 0x2ba   :  { %v1363_v17 = vadd.f32 %v2497_v24, %v1362_v36  ;;  %v2643_v52 = vpop.f32.mrb[1].mxu1 }
 0x2bc   :  { %v1366_v28 = vmax.f32 %v1363_v17, 0.0 }
 0x2be   :  { %v1367_v31 = vadd.f32 %v1366_v28, %v1222_v32 }
 0x2cf   :  { %v1506_v41 = vpop.f32.mrb[2].mxu0 }
 0x2d0   :  { %v1507_v38 = vadd.f32 %v2497_v24, %v1506_v41  ;;  %v2664_v35 = vpop.f32.mrb[3].mxu0 }
 0x2d2   :  { %v1510_v26 = vmax.f32 %v1507_v38, 0.0 }
 0x2d4   :  { %v1511_v16 = vadd.f32 %v1510_v26, %v1367_v31 }
 0x2d9   :  { %v1652_v6 = vpop.f32.mrb[2].mxu1 }
 0x2da   :  { %v1653_v62 = vadd.f32 %v2497_v24, %v1652_v6  ;;  %v2685_v13 = vpop.f32.mrb[3].mxu1 }
 0x2dc   :  { %v1656_v8 = vmax.f32 %v1653_v62, 0.0 }
 0x2de   :  { %v1657_v49 = vadd.f32 %v1656_v8, %v1511_v16 }
 0x2ef   :  { %v1784_v15 = vpop.f32.mrb[4].mxu0 }
 0x2f0   :  { %v1785_v37 = vadd.f32 %v2497_v24, %v1784_v15  ;;  %v2706_v23 = vpop.f32.mrb[5].mxu0 }
 0x2f2   :  { %v1788_v48 = vmax.f32 %v1785_v37, 0.0 }
 0x2f4   :  { %v1789_v21 = vadd.f32 %v1788_v48, %v1657_v49 }
 0x2f9   :  { %v1916_v57 = vpop.f32.mrb[4].mxu1 }
 0x2fa   :  { %v1917_v14 = vadd.f32 %v2497_v24, %v1916_v57  ;;  %v2727_v33 = vpop.f32.mrb[5].mxu1 }
 0x2fc   :  { %v1920_v55 = vmax.f32 %v1917_v14, 0.0 }
 0x2fe   :  { %v1921_v22 = vadd.f32 %v1920_v55, %v1789_v21 }
 0x32b   :  { %v2062_v45 = vpop.f32.mrb[6].mxu0 }
 0x32c   :  { %v2063_v46 = vadd.f32 %v2497_v24, %v2062_v45  ;;  %v2748_v59 = vpop.f32.mrb[7].mxu0 }
 0x32e   :  { %v2066_v30 = vmax.f32 %v2063_v46, 0.0 }
 0x330   :  { %v2067_v39 = vadd.f32 %v2066_v30, %v1921_v22 }
 0x33d   :  { %v2194_v58 = vpop.f32.mrb[6].mxu1 }
 0x33e   :  { %v2195_v20 = vadd.f32 %v2497_v24, %v2194_v58  ;;  %v2769_v2 = vpop.f32.mrb[7].mxu1 }
 0x340   :  { %v2198_v12 = vmax.f32 %v2195_v20, 0.0 }
 0x342   :  { %v2199_v34 = vadd.f32 %v2198_v12, %v2067_v39 }
 0x34b   :  { %v2326_v42 = vpop.f32.mrb[8].mxu0 }
 0x34c   :  { %v2327_v40 = vadd.f32 %v2497_v24, %v2326_v42  ;;  %v2790_v56 = vpop.f32.mrb[9].mxu0 }
 0x34e   :  { %v2330_v47 = vmax.f32 %v2327_v40, 0.0 }
 0x350   :  { %v2331_v29 = vadd.f32 %v2330_v47, %v2199_v34 }
 0x352   :  { %v2332_v25 = vmul.f32 0.11111111, %v2331_v29 }
 0x354   :  { %2796 = vmatmul.mubr.msk.f32.vlgmr.msra.gmra.mrb[8].mxu1 %vm1128_vm3, %v2332_v25 }
 0x427   :  { %v2411_v63 = vpop.f32.mrb[8].mxu1 }
 0x428   :  { %v2412_v60 = vadd.f32 %v2507_v7, %v2411_v63  ;;  %v2797_v11 = vpop.f32.mrb[9].mxu1 }
 0x42a   :  { %2416 = vst.msk [vmem:[#allocation3] sm:$0x3] %vm2415_vm12, %v2412_v60 }
 0x42b   :  { %2988 = shalt.err (!%p2985_p4)
}
 0x42c   :  { %s2989_s24 = scalar_lea.hbm %s4353_s7, 32 }
 0x42d   :  { %p2990_p5 = scmp.ne.s32.totalorder %s4353_s7, %s2989_s24  ;;  %p2993_p6 = scmp.lt.u32.totalorder %s2989_s24, %s4353_s7 }
 0x42f   :  { %p2995_p7 = pnand %p2993_p6, %p2990_p5 }
 0x431   :  { %2998 = shalt.err (!%p2995_p7)
}
 0x432   :  { %2426 = dma.vmem_to_hbm [thread:$0]  %s2424_s30, 32, %s4353_s7, [#allocation4]  }
 0x433   :  { %2999 = dma.done.wait [#allocation4], 32  }
 0x434   :  { %3000 = vsyncadd [#allocation4], 4294967264 }
 0x435   :  { %2430 = vsyncpa [#allocation4], 1 }

</bundles_post_ra>
